<compile_context>
chip_gen: v6e
topology: v6e:2x2x1
jax: 0.10.0
libtpu: 0.0.40
codegen_flags: <defaults>
</compile_context>

<pallas_src>
import functools
import math

import jax
import jax.numpy as jnp
from jax import lax
from jax.experimental import pallas as pl
from jax.experimental.pallas import tpu as pltpu

# ----------------------------- configuration --------------------------------
NUM_PUZZLE = 9
GRID_N = int(math.sqrt(NUM_PUZZLE))          # 3
SIZE_PUZZLE = 11                             # original 75 (3*11=33 -> crop -> 32)
THRESHOLD = 0.8
IMG_C = 3
PATCH = 8                                    # original 16
EMBED = 32                                   # original 768
HEADS = 4                                    # original 12
DH = EMBED // HEADS
DEPTH = 2                                    # original 12
MLP_HIDDEN = 4 * EMBED                       # original 3072
VIT_CLASSES = 64                             # original 1000
FC_HIDDEN = 128                              # original 4096

IMG_HW = GRID_N * SIZE_PUZZLE                # 33
CROP_HW = IMG_HW - 1                         # 32
N_PATCH = (CROP_HW // PATCH) ** 2            # 16
N_TOKENS = N_PATCH + 1                       # 17
PATCH_DIM = IMG_C * PATCH * PATCH            # 192
LN_EPS = 1e-6

MIN_DIST = (GRID_N - 0) / GRID_N             # 1.0 (as in the torch module)
_MAP_VALUES = jnp.arange(0, GRID_N, MIN_DIST, dtype=jnp.float32)
MAP_COORD = jnp.stack(
    jnp.meshgrid(_MAP_VALUES, _MAP_VALUES, indexing="ij"), axis=-1
).reshape(NUM_PUZZLE, 2)                     # [(i, j) for i in vals for j in vals]


# ----------------------------- Pallas kernels --------------------------------
def _ln(x, g, b, eps):
    mu = jnp.mean(x, axis=-1, keepdims=True)
    xc = x - mu
    var = jnp.mean(xc * xc, axis=-1, keepdims=True)
    return xc * lax.rsqrt(var + eps) * g + b


def _vit_fused_kernel(patches_ref, patch_w_ref, tok_add_ref, gvec_ref, head_w_ref,
                      qkv_w_ref, proj_w_ref, mlp_w1_ref, mlp_w2_ref, bvec_ref,
                      out_ref, x_sc, *, eps):
    """One grid step = (image b, transformer block d).  Residual stream stays in
    VMEM scratch x_sc across the depth ('arbitrary') axis."""
    d = pl.program_id(1)
    e = EMBED
    dh = DH
    scale = dh ** -0.5

    # ---- patch embed + cls/pos add (depth step 0 only) ----
    # patches row 0 is zero-padded (cls slot); tok_add holds cls+pos[0] on row 0
    # and pos[1:]+patch_bias on rows 1..N_PATCH, so one matmul + add builds x0.
    @pl.when(d == 0)
    def _():
        tok = jnp.dot(patches_ref[0], patch_w_ref[...],
                      preferred_element_type=jnp.float32)
        x_sc[...] = tok + tok_add_ref[...]

    x = x_sc[...]                                  # (T, E) VMEM-resident residual

    bvec = bvec_ref[0]                             # (8, 128) packed per-block vectors
    ln1_g = bvec[0:1, :e]
    ln1_b = bvec[1:2, :e]
    ln2_g = bvec[2:3, :e]
    ln2_b = bvec[3:4, :e]
    qkv_b = bvec[4:5, :3 * e]
    proj_b = bvec[5:6, :e]
    mlp_b1 = bvec[6:7, :MLP_HIDDEN]
    mlp_b2 = bvec[7:8, :e]

    # ---- attention (heads split / softmax / merge all in-kernel) ----
    y = _ln(x, ln1_g, ln1_b, eps)
    qkv = jnp.dot(y, qkv_w_ref[0], preferred_element_type=jnp.float32) + qkv_b  # (T, 3E)
    proj_w = proj_w_ref[0]                          # (E, E)
    attn = jnp.zeros_like(x)
    for h in range(HEADS):                          # statically unrolled, HEADS=4
        q = qkv[:, h * dh:(h + 1) * dh]
        k = qkv[:, e + h * dh: e + (h + 1) * dh]
        v = qkv[:, 2 * e + h * dh: 2 * e + (h + 1) * dh]
        s = jnp.einsum("qd,kd->qk", q, k, preferred_element_type=jnp.float32) * scale
        m = jnp.max(s, axis=-1, keepdims=True)
        p = jnp.exp(s - m)
        l = jnp.sum(p, axis=-1, keepdims=True)
        p = p * pl.reciprocal(l, approx=True)       # divide on EUP slot
        o_h = jnp.dot(p, v, preferred_element_type=jnp.float32)          # (T, DH)
        # concat-free head merge: concat_h(o_h) @ W == sum_h o_h @ W[h*dh:(h+1)*dh]
        attn = attn + jnp.dot(o_h, proj_w[h * dh:(h + 1) * dh, :],
                              preferred_element_type=jnp.float32)
    x = x + attn + proj_b

    # ---- MLP ----
    y = _ln(x, ln2_g, ln2_b, eps)
    h1 = jnp.dot(y, mlp_w1_ref[0], preferred_element_type=jnp.float32) + mlp_b1
    # TODO(synk): timm ViT uses exact (erf) GELU; tanh approximation used here.
    h1 = jax.nn.gelu(h1, approximate=True)
    x = x + jnp.dot(h1, mlp_w2_ref[0], preferred_element_type=jnp.float32) + mlp_b2
    x_sc[...] = x

    # ---- final LayerNorm + classifier head (last depth step only) ----
    @pl.when(d == pl.num_programs(1) - 1)
    def _():
        gvec = gvec_ref[...]
        ln_g = gvec[0:1, :e]
        ln_b = gvec[1:2, :e]
        head_b = gvec[2:3, :VIT_CLASSES]
        cls_out = _ln(x, ln_g, ln_b, eps)[0:1, :]                        # (1, E)
        out_ref[0] = (jnp.dot(cls_out, head_w_ref[...],
                              preferred_element_type=jnp.float32) + head_b)


def _fc_head_kernel(x_ref, w1_ref, w2_ref, w3_ref, w4_ref, w5_ref, bvec_ref, o_ref):
    """Fused fc1..fc5 (+ ReLU after fc1..fc4); activations never leave VMEM."""
    b = bvec_ref[...]                               # (8, 128) packed biases
    h = x_ref[...]
    h = jnp.maximum(jnp.dot(h, w1_ref[...], preferred_element_type=jnp.float32)
                    + b[0:1, :FC_HIDDEN], 0.0)
    h = jnp.maximum(jnp.dot(h, w2_ref[...], preferred_element_type=jnp.float32)
                    + b[1:2, :FC_HIDDEN], 0.0)
    h = jnp.maximum(jnp.dot(h, w3_ref[...], preferred_element_type=jnp.float32)
                    + b[2:3, :FC_HIDDEN], 0.0)
    h = jnp.maximum(jnp.dot(h, w4_ref[...], preferred_element_type=jnp.float32)
                    + b[3:4, :FC_HIDDEN], 0.0)
    o_ref[...] = (jnp.dot(h, w5_ref[...], preferred_element_type=jnp.float32)
                  + b[4:5, :NUM_PUZZLE * NUM_PUZZLE])


# ----------------------------- parameter init --------------------------------
def init_params(key):
    ks = iter(jax.random.split(key, 16))

    def dense(shape, scale=0.02):
        return scale * jax.random.normal(next(ks), shape, dtype=jnp.float32)

    patch_w = dense((PATCH_DIM, EMBED))
    patch_b = jnp.zeros((EMBED,), jnp.float32)
    cls_token = dense((EMBED,))
    pos_embed = dense((N_TOKENS, EMBED))

    # token_add: row 0 = cls + pos[0]; rows 1.. = pos[1:] + patch bias.
    token_add = jnp.concatenate(
        [(cls_token + pos_embed[0])[None, :],
         pos_embed[1:] + patch_b[None, :]], axis=0)          # (N_TOKENS, EMBED)

    # global packed vectors: row0 final-LN gamma, row1 final-LN beta, row2 head bias.
    gvec = jnp.zeros((8, 128), jnp.float32)
    gvec = gvec.at[0, :EMBED].set(1.0)

    head_w = dense((EMBED, VIT_CLASSES))

    # stacked per-block weights, indexed by the depth grid axis.
    qkv_w = dense((DEPTH, EMBED, 3 * EMBED))
    proj_w = dense((DEPTH, EMBED, EMBED))
    mlp_w1 = dense((DEPTH, EMBED, MLP_HIDDEN))
    mlp_w2 = dense((DEPTH, MLP_HIDDEN, EMBED))

    # packed per-block vectors (rows): 0 ln1_g, 1 ln1_b, 2 ln2_g, 3 ln2_b,
    # 4 qkv_b, 5 proj_b, 6 mlp_b1, 7 mlp_b2.
    bvec = jnp.zeros((DEPTH, 8, 128), jnp.float32)
    bvec = bvec.at[:, 0, :EMBED].set(1.0)
    bvec = bvec.at[:, 2, :EMBED].set(1.0)

    params = {
        "patch_w": patch_w, "token_add": token_add, "gvec": gvec,
        "head_w": head_w, "qkv_w": qkv_w, "proj_w": proj_w,
        "mlp_w1": mlp_w1, "mlp_w2": mlp_w2, "bvec": bvec,
        "fc_w1": dense((VIT_CLASSES, FC_HIDDEN)),
        "fc_w2": dense((FC_HIDDEN, FC_HIDDEN)),
        "fc_w3": dense((FC_HIDDEN, FC_HIDDEN)),
        "fc_w4": dense((FC_HIDDEN, FC_HIDDEN)),
        "fc_w5": dense((FC_HIDDEN, NUM_PUZZLE * NUM_PUZZLE)),
        "fc_bvec": jnp.zeros((8, 128), jnp.float32),   # rows 0..4 = fc1..fc5 biases
    }
    return params


# ----------------------------- model (JAX glue + fused Pallas) ----------------
def random_shuffle(x, key):
    """Shuffle the 3x3 puzzle pieces per image; return shuffled image and ids_restores."""
    n_img, c, h, w = x.shape
    p = SIZE_PUZZLE
    n = GRID_N
    noise = jax.random.uniform(key, (n_img, NUM_PUZZLE))
    ids_shuffles = jnp.argsort(noise, axis=1)
    ids_restores = jnp.argsort(ids_shuffles, axis=1)
    pieces = (x.reshape(n_img, c, n, p, n, p)
                .transpose(0, 2, 4, 1, 3, 5)
                .reshape(n_img, NUM_PUZZLE, c, p, p))
    shuffled = jnp.take_along_axis(
        pieces, ids_shuffles[:, :, None, None, None], axis=1)
    x_shuf = (shuffled.reshape(n_img, n, n, c, p, p)
                       .transpose(0, 3, 1, 4, 2, 5)
                       .reshape(n_img, c, h, w))
    return x_shuf, ids_restores


def vit_forward(params, x):
    """Fused ViT trunk: NCHW image -> (N, VIT_CLASSES) in a single pallas_call."""
    n_img = x.shape[0]
    hp = wp = CROP_HW // PATCH
    patches = (x.reshape(n_img, IMG_C, hp, PATCH, wp, PATCH)
                 .transpose(0, 2, 4, 1, 3, 5)
                 .reshape(n_img, N_PATCH, PATCH_DIM))
    # zero row 0 = cls-token slot (folded into token_add inside the kernel).
    patches = jnp.pad(patches, ((0, 0), (1, 0), (0, 0)))      # (n_img, N_TOKENS, 192)

    out = pl.pallas_call(
        functools.partial(_vit_fused_kernel, eps=LN_EPS),
        out_shape=jax.ShapeDtypeStruct((n_img, 1, VIT_CLASSES), jnp.float32),
        grid=(n_img, DEPTH),
        in_specs=[
            pl.BlockSpec((1, N_TOKENS, PATCH_DIM), lambda b, d: (b, 0, 0)),   # patches
            pl.BlockSpec((PATCH_DIM, EMBED), lambda b, d: (0, 0)),            # patch_w
            pl.BlockSpec((N_TOKENS, EMBED), lambda b, d: (0, 0)),             # token_add
            pl.BlockSpec((8, 128), lambda b, d: (0, 0)),                      # gvec
            pl.BlockSpec((EMBED, VIT_CLASSES), lambda b, d: (0, 0)),          # head_w
            pl.BlockSpec((1, EMBED, 3 * EMBED), lambda b, d: (d, 0, 0)),      # qkv_w
            pl.BlockSpec((1, EMBED, EMBED), lambda b, d: (d, 0, 0)),          # proj_w
            pl.BlockSpec((1, EMBED, MLP_HIDDEN), lambda b, d: (d, 0, 0)),     # mlp_w1
            pl.BlockSpec((1, MLP_HIDDEN, EMBED), lambda b, d: (d, 0, 0)),     # mlp_w2
            pl.BlockSpec((1, 8, 128), lambda b, d: (d, 0, 0)),                # bvec
        ],
        out_specs=pl.BlockSpec((1, 1, VIT_CLASSES), lambda b, d: (b, 0, 0)),
        scratch_shapes=[pltpu.VMEM((N_TOKENS, EMBED), jnp.float32)],
        compiler_params=pltpu.CompilerParams(
            dimension_semantics=("parallel", "arbitrary")),
    )(patches, params["patch_w"], params["token_add"], params["gvec"],
      params["head_w"], params["qkv_w"], params["proj_w"],
      params["mlp_w1"], params["mlp_w2"], params["bvec"])
    return out.reshape(n_img, VIT_CLASSES)


def fc_head(params, feats):
    n = feats.shape[0]
    np2 = NUM_PUZZLE * NUM_PUZZLE
    return pl.pallas_call(
        _fc_head_kernel,
        out_shape=jax.ShapeDtypeStruct((n, np2), jnp.float32),
        grid=(1,),
        in_specs=[
            pl.BlockSpec((n, VIT_CLASSES), lambda i: (0, 0)),
            pl.BlockSpec((VIT_CLASSES, FC_HIDDEN), lambda i: (0, 0)),
            pl.BlockSpec((FC_HIDDEN, FC_HIDDEN), lambda i: (0, 0)),
            pl.BlockSpec((FC_HIDDEN, FC_HIDDEN), lambda i: (0, 0)),
            pl.BlockSpec((FC_HIDDEN, FC_HIDDEN), lambda i: (0, 0)),
            pl.BlockSpec((FC_HIDDEN, np2), lambda i: (0, 0)),
            pl.BlockSpec((8, 128), lambda i: (0, 0)),
        ],
        out_specs=pl.BlockSpec((n, np2), lambda i: (0, 0)),
    )(feats, params["fc_w1"], params["fc_w2"], params["fc_w3"], params["fc_w4"],
      params["fc_w5"], params["fc_bvec"])


def forward_loss_var(logits):
    """torch: argmax over dim=1, map to coords, cdist + eye, sum(relu(thr*min_dist - d)).
    Tiny (N*9*9 elements) -> plain JAX, XLA fuses it with the argmax/gather glue."""
    idx = jnp.argmax(logits, axis=1)                  # (N, num_puzzle)
    coords = MAP_COORD[idx]                           # (N, num_puzzle, 2)
    diff = coords[:, :, None, :] - coords[:, None, :, :]
    d = jnp.sqrt(jnp.sum(diff * diff, axis=-1))
    d = d + jnp.eye(NUM_PUZZLE, dtype=d.dtype)[None]
    return jnp.sum(jnp.maximum(THRESHOLD * MIN_DIST - d, 0.0))


def puzzle_vit_forward(params, x, shuffle_key):
    x_shuf, target = random_shuffle(x, shuffle_key)
    x_crop = x_shuf[:, :, :-1, :-1]                   # 33x33 -> 32x32
    feats = vit_forward(params, x_crop)               # (N, VIT_CLASSES)
    out = fc_head(params, feats).reshape(-1, NUM_PUZZLE, NUM_PUZZLE)
    loss_var = forward_loss_var(out)
    return out, target, loss_var


# ----------------------------- main -------------------------------------------
if __name__ == "__main__":
    key = jax.random.PRNGKey(0)
    pkey, xkey, skey = jax.random.split(key, 3)
    params = init_params(pkey)

    batch = 2
    x = jax.random.normal(xkey, (batch, IMG_C, IMG_HW, IMG_HW), dtype=jnp.float32)

    fwd = jax.jit(puzzle_vit_forward)
    out, target, loss_var = fwd(params, x, skey)
    jax.block_until_ready((out, target, loss_var))

    assert out.shape == (batch, NUM_PUZZLE, NUM_PUZZLE)
    assert target.shape == (batch, NUM_PUZZLE)
    assert loss_var.shape == ()
    assert bool(jnp.all(jnp.isfinite(out)))
    print("KERNEL_OK")
</pallas_src>

<mosaic_0001>
module attributes {stable_mosaic.version = 11 : i64} {
  func.func @_fc_head_kernel(%arg0: i32, %arg1: memref<2x64xf32, #tpu.memory_space<vmem>>, %arg2: memref<64x128xf32, #tpu.memory_space<vmem>>, %arg3: memref<128x128xf32, #tpu.memory_space<vmem>>, %arg4: memref<128x128xf32, #tpu.memory_space<vmem>>, %arg5: memref<128x128xf32, #tpu.memory_space<vmem>>, %arg6: memref<128x81xf32, #tpu.memory_space<vmem>>, %arg7: memref<8x128xf32, #tpu.memory_space<vmem>>, %arg8: memref<2x81xf32, #tpu.memory_space<vmem>>) attributes {dimension_semantics = [#tpu.dimension_semantics<arbitrary>], iteration_bounds = array<i64: 1>, scalar_prefetch = 0 : i64, scratch_operands = 0 : i64, tpu.core_type = #tpu.core_type<tc>, window_params = [{pipeline_mode = #tpu.pipeline_mode<synchronous>, transform_indices = @transform_0, window_bounds = array<i64: 2, 64>}, {pipeline_mode = #tpu.pipeline_mode<synchronous>, transform_indices = @transform_1, window_bounds = array<i64: 64, 128>}, {pipeline_mode = #tpu.pipeline_mode<synchronous>, transform_indices = @transform_2, window_bounds = array<i64: 128, 128>}, {pipeline_mode = #tpu.pipeline_mode<synchronous>, transform_indices = @transform_3, window_bounds = array<i64: 128, 128>}, {pipeline_mode = #tpu.pipeline_mode<synchronous>, transform_indices = @transform_4, window_bounds = array<i64: 128, 128>}, {pipeline_mode = #tpu.pipeline_mode<synchronous>, transform_indices = @transform_5, window_bounds = array<i64: 128, 81>}, {pipeline_mode = #tpu.pipeline_mode<synchronous>, transform_indices = @transform_6, window_bounds = array<i64: 8, 128>}, {pipeline_mode = #tpu.pipeline_mode<synchronous>, transform_indices = @transform_7, window_bounds = array<i64: 2, 81>}]} {
    %c0 = arith.constant 0 : index
    %c0_0 = arith.constant 0 : index
    %0 = vector.load %arg7[%c0, %c0_0] : memref<8x128xf32, #tpu.memory_space<vmem>>, vector<8x128xf32>
    %c0_1 = arith.constant 0 : index
    %c0_2 = arith.constant 0 : index
    %1 = vector.load %arg1[%c0_1, %c0_2] : memref<2x64xf32, #tpu.memory_space<vmem>>, vector<2x64xf32>
    %c0_3 = arith.constant 0 : index
    %c0_4 = arith.constant 0 : index
    %2 = vector.load %arg2[%c0_3, %c0_4] : memref<64x128xf32, #tpu.memory_space<vmem>>, vector<64x128xf32>
    %cst = arith.constant dense<0.000000e+00> : vector<2x128xf32>
    %3 = tpu.matmul %1, %2, %cst {dimension_numbers = #tpu.dot_dimension_numbers<[1], [0], [0], [1], [0, 0, 1, 1], [], []>} : vector<2x64xf32>, vector<64x128xf32>, vector<2x128xf32> -> vector<2x128xf32>
    %4 = vector.extract_strided_slice %0 {offsets = [0, 0], sizes = [1, 128], strides = [1, 1]} : vector<8x128xf32> to vector<1x128xf32>
    %5 = vector.broadcast %4 : vector<1x128xf32> to vector<2x128xf32>
    %6 = arith.addf %3, %5 : vector<2x128xf32>
    %cst_5 = arith.constant 0.000000e+00 : f32
    %7 = vector.broadcast %cst_5 : f32 to vector<2x128xf32>
    %8 = arith.maximumf %6, %7 : vector<2x128xf32>
    %c0_6 = arith.constant 0 : index
    %c0_7 = arith.constant 0 : index
    %9 = vector.load %arg3[%c0_6, %c0_7] : memref<128x128xf32, #tpu.memory_space<vmem>>, vector<128x128xf32>
    %cst_8 = arith.constant dense<0.000000e+00> : vector<2x128xf32>
    %10 = tpu.matmul %8, %9, %cst_8 {dimension_numbers = #tpu.dot_dimension_numbers<[1], [0], [0], [1], [0, 0, 1, 1], [], []>} : vector<2x128xf32>, vector<128x128xf32>, vector<2x128xf32> -> vector<2x128xf32>
    %11 = vector.extract_strided_slice %0 {offsets = [1, 0], sizes = [1, 128], strides = [1, 1]} : vector<8x128xf32> to vector<1x128xf32>
    %12 = vector.broadcast %11 : vector<1x128xf32> to vector<2x128xf32>
    %13 = arith.addf %10, %12 : vector<2x128xf32>
    %cst_9 = arith.constant 0.000000e+00 : f32
    %14 = vector.broadcast %cst_9 : f32 to vector<2x128xf32>
    %15 = arith.maximumf %13, %14 : vector<2x128xf32>
    %c0_10 = arith.constant 0 : index
    %c0_11 = arith.constant 0 : index
    %16 = vector.load %arg4[%c0_10, %c0_11] : memref<128x128xf32, #tpu.memory_space<vmem>>, vector<128x128xf32>
    %cst_12 = arith.constant dense<0.000000e+00> : vector<2x128xf32>
    %17 = tpu.matmul %15, %16, %cst_12 {dimension_numbers = #tpu.dot_dimension_numbers<[1], [0], [0], [1], [0, 0, 1, 1], [], []>} : vector<2x128xf32>, vector<128x128xf32>, vector<2x128xf32> -> vector<2x128xf32>
    %18 = vector.extract_strided_slice %0 {offsets = [2, 0], sizes = [1, 128], strides = [1, 1]} : vector<8x128xf32> to vector<1x128xf32>
    %19 = vector.broadcast %18 : vector<1x128xf32> to vector<2x128xf32>
    %20 = arith.addf %17, %19 : vector<2x128xf32>
    %cst_13 = arith.constant 0.000000e+00 : f32
    %21 = vector.broadcast %cst_13 : f32 to vector<2x128xf32>
    %22 = arith.maximumf %20, %21 : vector<2x128xf32>
    %c0_14 = arith.constant 0 : index
    %c0_15 = arith.constant 0 : index
    %23 = vector.load %arg5[%c0_14, %c0_15] : memref<128x128xf32, #tpu.memory_space<vmem>>, vector<128x128xf32>
    %cst_16 = arith.constant dense<0.000000e+00> : vector<2x128xf32>
    %24 = tpu.matmul %22, %23, %cst_16 {dimension_numbers = #tpu.dot_dimension_numbers<[1], [0], [0], [1], [0, 0, 1, 1], [], []>} : vector<2x128xf32>, vector<128x128xf32>, vector<2x128xf32> -> vector<2x128xf32>
    %25 = vector.extract_strided_slice %0 {offsets = [3, 0], sizes = [1, 128], strides = [1, 1]} : vector<8x128xf32> to vector<1x128xf32>
    %26 = vector.broadcast %25 : vector<1x128xf32> to vector<2x128xf32>
    %27 = arith.addf %24, %26 : vector<2x128xf32>
    %cst_17 = arith.constant 0.000000e+00 : f32
    %28 = vector.broadcast %cst_17 : f32 to vector<2x128xf32>
    %29 = arith.maximumf %27, %28 : vector<2x128xf32>
    %c0_18 = arith.constant 0 : index
    %c0_19 = arith.constant 0 : index
    %30 = vector.load %arg6[%c0_18, %c0_19] : memref<128x81xf32, #tpu.memory_space<vmem>>, vector<128x81xf32>
    %cst_20 = arith.constant dense<0.000000e+00> : vector<2x81xf32>
    %31 = tpu.matmul %29, %30, %cst_20 {dimension_numbers = #tpu.dot_dimension_numbers<[1], [0], [0], [1], [0, 0, 1, 1], [], []>} : vector<2x128xf32>, vector<128x81xf32>, vector<2x81xf32> -> vector<2x81xf32>
    %32 = vector.extract_strided_slice %0 {offsets = [4, 0], sizes = [1, 81], strides = [1, 1]} : vector<8x128xf32> to vector<1x81xf32>
    %33 = vector.broadcast %32 : vector<1x81xf32> to vector<2x81xf32>
    %34 = arith.addf %31, %33 : vector<2x81xf32>
    %c0_21 = arith.constant 0 : index
    %c0_22 = arith.constant 0 : index
    %35 = vector.load %arg8[%c0_21, %c0_22] : memref<2x81xf32, #tpu.memory_space<vmem>>, vector<2x81xf32>
    tpu.vector_store %arg8[%c0_21, %c0_22], %34 {strides = array<i32>} : memref<2x81xf32, #tpu.memory_space<vmem>>, vector<2x81xf32>,
    return
  }
  func.func @transform_0(%arg0: i32) -> (i32, i32) {
    %c0_i32 = arith.constant 0 : i32
    %c0_i32_0 = arith.constant 0 : i32
    %c0_i32_1 = arith.constant 0 : i32
    return %c0_i32, %c0_i32_0 : i32, i32
  }
  func.func @transform_1(%arg0: i32) -> (i32, i32) {
    %c0_i32 = arith.constant 0 : i32
    %c0_i32_0 = arith.constant 0 : i32
    %c0_i32_1 = arith.constant 0 : i32
    return %c0_i32, %c0_i32_0 : i32, i32
  }
  func.func @transform_2(%arg0: i32) -> (i32, i32) {
    %c0_i32 = arith.constant 0 : i32
    %c0_i32_0 = arith.constant 0 : i32
    %c0_i32_1 = arith.constant 0 : i32
    return %c0_i32, %c0_i32_0 : i32, i32
  }
  func.func @transform_3(%arg0: i32) -> (i32, i32) {
    %c0_i32 = arith.constant 0 : i32
    %c0_i32_0 = arith.constant 0 : i32
    %c0_i32_1 = arith.constant 0 : i32
    return %c0_i32, %c0_i32_0 : i32, i32
  }
  func.func @transform_4(%arg0: i32) -> (i32, i32) {
    %c0_i32 = arith.constant 0 : i32
    %c0_i32_0 = arith.constant 0 : i32
    %c0_i32_1 = arith.constant 0 : i32
    return %c0_i32, %c0_i32_0 : i32, i32
  }
  func.func @transform_5(%arg0: i32) -> (i32, i32) {
    %c0_i32 = arith.constant 0 : i32
    %c0_i32_0 = arith.constant 0 : i32
    %c0_i32_1 = arith.constant 0 : i32
    return %c0_i32, %c0_i32_0 : i32, i32
  }
  func.func @transform_6(%arg0: i32) -> (i32, i32) {
    %c0_i32 = arith.constant 0 : i32
    %c0_i32_0 = arith.constant 0 : i32
    %c0_i32_1 = arith.constant 0 : i32
    return %c0_i32, %c0_i32_0 : i32, i32
  }
  func.func @transform_7(%arg0: i32) -> (i32, i32) {
    %c0_i32 = arith.constant 0 : i32
    %c0_i32_0 = arith.constant 0 : i32
    %c0_i32_1 = arith.constant 0 : i32
    return %c0_i32, %c0_i32_0 : i32, i32
  }
}

module attributes {stable_mosaic.version = 11 : i64} {
  func.func @_vit_fused_kernel(%arg0: i32, %arg1: i32, %arg2: memref<1x17x192xf32, #tpu.memory_space<vmem>>, %arg3: memref<192x32xf32, #tpu.memory_space<vmem>>, %arg4: memref<17x32xf32, #tpu.memory_space<vmem>>, %arg5: memref<8x128xf32, #tpu.memory_space<vmem>>, %arg6: memref<32x64xf32, #tpu.memory_space<vmem>>, %arg7: memref<1x32x96xf32, #tpu.memory_space<vmem>>, %arg8: memref<1x32x32xf32, #tpu.memory_space<vmem>>, %arg9: memref<1x32x128xf32, #tpu.memory_space<vmem>>, %arg10: memref<1x128x32xf32, #tpu.memory_space<vmem>>, %arg11: memref<1x8x128xf32, #tpu.memory_space<vmem>>, %arg12: memref<1x1x64xf32, #tpu.memory_space<vmem>>, %arg13: memref<17x32xf32, #tpu.memory_space<vmem>>) attributes {dimension_semantics = [#tpu.dimension_semantics<parallel>, #tpu.dimension_semantics<arbitrary>], iteration_bounds = array<i64: 2, 2>, scalar_prefetch = 0 : i64, scratch_operands = 1 : i64, tpu.core_type = #tpu.core_type<tc>, window_params = [{transform_indices = @transform_0, window_bounds = array<i64: 1, 17, 192>}, {pipeline_mode = #tpu.pipeline_mode<synchronous>, transform_indices = @transform_1, window_bounds = array<i64: 192, 32>}, {pipeline_mode = #tpu.pipeline_mode<synchronous>, transform_indices = @transform_2, window_bounds = array<i64: 17, 32>}, {pipeline_mode = #tpu.pipeline_mode<synchronous>, transform_indices = @transform_3, window_bounds = array<i64: 8, 128>}, {pipeline_mode = #tpu.pipeline_mode<synchronous>, transform_indices = @transform_4, window_bounds = array<i64: 32, 64>}, {transform_indices = @transform_5, window_bounds = array<i64: 1, 32, 96>}, {transform_indices = @transform_6, window_bounds = array<i64: 1, 32, 32>}, {transform_indices = @transform_7, window_bounds = array<i64: 1, 32, 128>}, {transform_indices = @transform_8, window_bounds = array<i64: 1, 128, 32>}, {transform_indices = @transform_9, window_bounds = array<i64: 1, 8, 128>}, {transform_indices = @transform_10, window_bounds = array<i64: 1, 1, 64>}]} {
    %c0_i32 = arith.constant 0 : i32
    %0 = arith.cmpi eq, %arg1, %c0_i32 : i32
    %1 = arith.extui %0 : i1 to i32
    %c0_i32_0 = arith.constant 0 : i32
    %2 = arith.cmpi ne, %1, %c0_i32_0 : i32
    scf.if %2 {
      %c0_61 = arith.constant 0 : index
      %c0_62 = arith.constant 0 : index
      %c0_63 = arith.constant 0 : index
      %173 = vector.load %arg2[%c0_61, %c0_62, %c0_63] : memref<1x17x192xf32, #tpu.memory_space<vmem>>, vector<1x17x192xf32>
      %174 = vector.shape_cast %173 : vector<1x17x192xf32> to vector<17x192xf32>
      %c0_64 = arith.constant 0 : index
      %c0_65 = arith.constant 0 : index
      %175 = vector.load %arg3[%c0_64, %c0_65] : memref<192x32xf32, #tpu.memory_space<vmem>>, vector<192x32xf32>
      %cst_66 = arith.constant dense<0.000000e+00> : vector<17x32xf32>
      %176 = tpu.matmul %174, %175, %cst_66 {dimension_numbers = #tpu.dot_dimension_numbers<[1], [0], [0], [1], [0, 0, 1, 1], [], []>} : vector<17x192xf32>, vector<192x32xf32>, vector<17x32xf32> -> vector<17x32xf32>
      %c0_67 = arith.constant 0 : index
      %c0_68 = arith.constant 0 : index
      %177 = vector.load %arg4[%c0_67, %c0_68] : memref<17x32xf32, #tpu.memory_space<vmem>>, vector<17x32xf32>
      %178 = arith.addf %176, %177 : vector<17x32xf32>
      %c0_69 = arith.constant 0 : index
      %c0_70 = arith.constant 0 : index
      %179 = vector.load %arg13[%c0_69, %c0_70] : memref<17x32xf32, #tpu.memory_space<vmem>>, vector<17x32xf32>
      tpu.vector_store %arg13[%c0_69, %c0_70], %178 {strides = array<i32>} : memref<17x32xf32, #tpu.memory_space<vmem>>, vector<17x32xf32>,
    } else {
    }
    %c0 = arith.constant 0 : index
    %c0_1 = arith.constant 0 : index
    %3 = vector.load %arg13[%c0, %c0_1] : memref<17x32xf32, #tpu.memory_space<vmem>>, vector<17x32xf32>
    %c0_2 = arith.constant 0 : index
    %c0_3 = arith.constant 0 : index
    %c0_4 = arith.constant 0 : index
    %4 = vector.load %arg11[%c0_2, %c0_3, %c0_4] : memref<1x8x128xf32, #tpu.memory_space<vmem>>, vector<1x8x128xf32>
    %5 = vector.shape_cast %4 : vector<1x8x128xf32> to vector<8x128xf32>
    %6 = vector.extract_strided_slice %5 {offsets = [0, 0], sizes = [1, 32], strides = [1, 1]} : vector<8x128xf32> to vector<1x32xf32>
    %7 = vector.extract_strided_slice %5 {offsets = [1, 0], sizes = [1, 32], strides = [1, 1]} : vector<8x128xf32> to vector<1x32xf32>
    %8 = vector.extract_strided_slice %5 {offsets = [2, 0], sizes = [1, 32], strides = [1, 1]} : vector<8x128xf32> to vector<1x32xf32>
    %9 = vector.extract_strided_slice %5 {offsets = [3, 0], sizes = [1, 32], strides = [1, 1]} : vector<8x128xf32> to vector<1x32xf32>
    %10 = vector.extract_strided_slice %5 {offsets = [4, 0], sizes = [1, 96], strides = [1, 1]} : vector<8x128xf32> to vector<1x96xf32>
    %11 = vector.extract_strided_slice %5 {offsets = [5, 0], sizes = [1, 32], strides = [1, 1]} : vector<8x128xf32> to vector<1x32xf32>
    %12 = vector.extract_strided_slice %5 {offsets = [6, 0], sizes = [1, 128], strides = [1, 1]} : vector<8x128xf32> to vector<1x128xf32>
    %13 = vector.extract_strided_slice %5 {offsets = [7, 0], sizes = [1, 32], strides = [1, 1]} : vector<8x128xf32> to vector<1x32xf32>
    %cst = arith.constant dense<0.000000e+00> : vector<17xf32>
    %14 = vector.multi_reduction <add>, %3, %cst [1] : vector<17x32xf32> to vector<17xf32>
    %15 = vector.shape_cast %14 : vector<17xf32> to vector<17x1xf32>
    %cst_5 = arith.constant 3.200000e+01 : f32
    %16 = vector.broadcast %cst_5 : f32 to vector<17x1xf32>
    %17 = arith.divf %15, %16 : vector<17x1xf32>
    %18 = vector.broadcast %17 : vector<17x1xf32> to vector<17x32xf32>
    %19 = arith.subf %3, %18 : vector<17x32xf32>
    %20 = arith.mulf %19, %19 : vector<17x32xf32>
    %cst_6 = arith.constant dense<0.000000e+00> : vector<17xf32>
    %21 = vector.multi_reduction <add>, %20, %cst_6 [1] : vector<17x32xf32> to vector<17xf32>
    %22 = vector.shape_cast %21 : vector<17xf32> to vector<17x1xf32>
    %cst_7 = arith.constant 3.200000e+01 : f32
    %23 = vector.broadcast %cst_7 : f32 to vector<17x1xf32>
    %24 = arith.divf %22, %23 : vector<17x1xf32>
    %cst_8 = arith.constant 9.99999997E-7 : f32
    %25 = vector.broadcast %cst_8 : f32 to vector<17x1xf32>
    %26 = arith.addf %24, %25 : vector<17x1xf32>
    %27 = math.rsqrt %26 : vector<17x1xf32>
    %28 = vector.broadcast %27 : vector<17x1xf32> to vector<17x32xf32>
    %29 = arith.mulf %19, %28 : vector<17x32xf32>
    %30 = vector.broadcast %6 : vector<1x32xf32> to vector<17x32xf32>
    %31 = arith.mulf %29, %30 : vector<17x32xf32>
    %32 = vector.broadcast %7 : vector<1x32xf32> to vector<17x32xf32>
    %33 = arith.addf %31, %32 : vector<17x32xf32>
    %c0_9 = arith.constant 0 : index
    %c0_10 = arith.constant 0 : index
    %c0_11 = arith.constant 0 : index
    %34 = vector.load %arg7[%c0_9, %c0_10, %c0_11] : memref<1x32x96xf32, #tpu.memory_space<vmem>>, vector<1x32x96xf32>
    %35 = vector.shape_cast %34 : vector<1x32x96xf32> to vector<32x96xf32>
    %cst_12 = arith.constant dense<0.000000e+00> : vector<17x96xf32>
    %36 = tpu.matmul %33, %35, %cst_12 {dimension_numbers = #tpu.dot_dimension_numbers<[1], [0], [0], [1], [0, 0, 1, 1], [], []>} : vector<17x32xf32>, vector<32x96xf32>, vector<17x96xf32> -> vector<17x96xf32>
    %37 = vector.broadcast %10 : vector<1x96xf32> to vector<17x96xf32>
    %38 = arith.addf %36, %37 : vector<17x96xf32>
    %c0_13 = arith.constant 0 : index
    %c0_14 = arith.constant 0 : index
    %c0_15 = arith.constant 0 : index
    %39 = vector.load %arg8[%c0_13, %c0_14, %c0_15] : memref<1x32x32xf32, #tpu.memory_space<vmem>>, vector<1x32x32xf32>
    %40 = vector.shape_cast %39 : vector<1x32x32xf32> to vector<32x32xf32>
    %cst_16 = arith.constant 0.000000e+00 : f32
    %41 = vector.broadcast %cst_16 : f32 to vector<17x32xf32>
    %42 = vector.extract_strided_slice %38 {offsets = [0, 0], sizes = [17, 8], strides = [1, 1]} : vector<17x96xf32> to vector<17x8xf32>
    %43 = vector.extract_strided_slice %38 {offsets = [0, 32], sizes = [17, 8], strides = [1, 1]} : vector<17x96xf32> to vector<17x8xf32>
    %44 = vector.extract_strided_slice %38 {offsets = [0, 64], sizes = [17, 8], strides = [1, 1]} : vector<17x96xf32> to vector<17x8xf32>
    "tpu.trace_start"() <{level = 10 : i32, message = "qd,kd->qk"}> : () -> ()
    %cst_17 = arith.constant dense<0.000000e+00> : vector<17x17xf32>
    %45 = tpu.matmul %42, %43, %cst_17 {dimension_numbers = #tpu.dot_dimension_numbers<[1], [1], [0], [0], [0, 0, 1, 0], [], []>} : vector<17x8xf32>, vector<17x8xf32>, vector<17x17xf32> -> vector<17x17xf32>
    "tpu.trace_stop"() : () -> ()
    %cst_18 = arith.constant 0.353553385 : f32
    %46 = vector.broadcast %cst_18 : f32 to vector<17x17xf32>
    %47 = arith.mulf %45, %46 : vector<17x17xf32>
    %cst_19 = arith.constant dense<0xFF800000> : vector<17xf32>
    %48 = vector.multi_reduction <maximumf>, %47, %cst_19 [1] : vector<17x17xf32> to vector<17xf32>
    %49 = vector.shape_cast %48 : vector<17xf32> to vector<17x1xf32>
    %50 = vector.broadcast %49 : vector<17x1xf32> to vector<17x17xf32>
    %51 = arith.subf %47, %50 : vector<17x17xf32>
    %52 = math.exp %51 : vector<17x17xf32>
    %cst_20 = arith.constant dense<0.000000e+00> : vector<17xf32>
    %53 = vector.multi_reduction <add>, %52, %cst_20 [1] : vector<17x17xf32> to vector<17xf32>
    %54 = vector.shape_cast %53 : vector<17xf32> to vector<17x1xf32>
    %55 = tpu.reciprocal %54 {approx = true} : vector<17x1xf32> -> vector<17x1xf32>
    %56 = vector.broadcast %55 : vector<17x1xf32> to vector<17x17xf32>
    %57 = arith.mulf %52, %56 : vector<17x17xf32>
    %cst_21 = arith.constant dense<0.000000e+00> : vector<17x8xf32>
    %58 = tpu.matmul %57, %44, %cst_21 {dimension_numbers = #tpu.dot_dimension_numbers<[1], [0], [0], [1], [0, 0, 1, 1], [], []>} : vector<17x17xf32>, vector<17x8xf32>, vector<17x8xf32> -> vector<17x8xf32>
    %59 = vector.extract_strided_slice %40 {offsets = [0, 0], sizes = [8, 32], strides = [1, 1]} : vector<32x32xf32> to vector<8x32xf32>
    %cst_22 = arith.constant dense<0.000000e+00> : vector<17x32xf32>
    %60 = tpu.matmul %58, %59, %cst_22 {dimension_numbers = #tpu.dot_dimension_numbers<[1], [0], [0], [1], [0, 0, 1, 1], [], []>} : vector<17x8xf32>, vector<8x32xf32>, vector<17x32xf32> -> vector<17x32xf32>
    %61 = arith.addf %41, %60 : vector<17x32xf32>
    %62 = vector.extract_strided_slice %38 {offsets = [0, 8], sizes = [17, 8], strides = [1, 1]} : vector<17x96xf32> to vector<17x8xf32>
    %63 = vector.extract_strided_slice %38 {offsets = [0, 40], sizes = [17, 8], strides = [1, 1]} : vector<17x96xf32> to vector<17x8xf32>
    %64 = vector.extract_strided_slice %38 {offsets = [0, 72], sizes = [17, 8], strides = [1, 1]} : vector<17x96xf32> to vector<17x8xf32>
    "tpu.trace_start"() <{level = 10 : i32, message = "qd,kd->qk"}> : () -> ()
    %cst_23 = arith.constant dense<0.000000e+00> : vector<17x17xf32>
    %65 = tpu.matmul %62, %63, %cst_23 {dimension_numbers = #tpu.dot_dimension_numbers<[1], [1], [0], [0], [0, 0, 1, 0], [], []>} : vector<17x8xf32>, vector<17x8xf32>, vector<17x17xf32> -> vector<17x17xf32>
    "tpu.trace_stop"() : () -> ()
    %cst_24 = arith.constant 0.353553385 : f32
    %66 = vector.broadcast %cst_24 : f32 to vector<17x17xf32>
    %67 = arith.mulf %65, %66 : vector<17x17xf32>
    %cst_25 = arith.constant dense<0xFF800000> : vector<17xf32>
    %68 = vector.multi_reduction <maximumf>, %67, %cst_25 [1] : vector<17x17xf32> to vector<17xf32>
    %69 = vector.shape_cast %68 : vector<17xf32> to vector<17x1xf32>
    %70 = vector.broadcast %69 : vector<17x1xf32> to vector<17x17xf32>
    %71 = arith.subf %67, %70 : vector<17x17xf32>
    %72 = math.exp %71 : vector<17x17xf32>
    %cst_26 = arith.constant dense<0.000000e+00> : vector<17xf32>
    %73 = vector.multi_reduction <add>, %72, %cst_26 [1] : vector<17x17xf32> to vector<17xf32>
    %74 = vector.shape_cast %73 : vector<17xf32> to vector<17x1xf32>
    %75 = tpu.reciprocal %74 {approx = true} : vector<17x1xf32> -> vector<17x1xf32>
    %76 = vector.broadcast %75 : vector<17x1xf32> to vector<17x17xf32>
    %77 = arith.mulf %72, %76 : vector<17x17xf32>
    %cst_27 = arith.constant dense<0.000000e+00> : vector<17x8xf32>
    %78 = tpu.matmul %77, %64, %cst_27 {dimension_numbers = #tpu.dot_dimension_numbers<[1], [0], [0], [1], [0, 0, 1, 1], [], []>} : vector<17x17xf32>, vector<17x8xf32>, vector<17x8xf32> -> vector<17x8xf32>
    %79 = vector.extract_strided_slice %40 {offsets = [8, 0], sizes = [8, 32], strides = [1, 1]} : vector<32x32xf32> to vector<8x32xf32>
    %cst_28 = arith.constant dense<0.000000e+00> : vector<17x32xf32>
    %80 = tpu.matmul %78, %79, %cst_28 {dimension_numbers = #tpu.dot_dimension_numbers<[1], [0], [0], [1], [0, 0, 1, 1], [], []>} : vector<17x8xf32>, vector<8x32xf32>, vector<17x32xf32> -> vector<17x32xf32>
    %81 = arith.addf %61, %80 : vector<17x32xf32>
    %82 = vector.extract_strided_slice %38 {offsets = [0, 16], sizes = [17, 8], strides = [1, 1]} : vector<17x96xf32> to vector<17x8xf32>
    %83 = vector.extract_strided_slice %38 {offsets = [0, 48], sizes = [17, 8], strides = [1, 1]} : vector<17x96xf32> to vector<17x8xf32>
    %84 = vector.extract_strided_slice %38 {offsets = [0, 80], sizes = [17, 8], strides = [1, 1]} : vector<17x96xf32> to vector<17x8xf32>
    "tpu.trace_start"() <{level = 10 : i32, message = "qd,kd->qk"}> : () -> ()
    %cst_29 = arith.constant dense<0.000000e+00> : vector<17x17xf32>
    %85 = tpu.matmul %82, %83, %cst_29 {dimension_numbers = #tpu.dot_dimension_numbers<[1], [1], [0], [0], [0, 0, 1, 0], [], []>} : vector<17x8xf32>, vector<17x8xf32>, vector<17x17xf32> -> vector<17x17xf32>
    "tpu.trace_stop"() : () -> ()
    %cst_30 = arith.constant 0.353553385 : f32
    %86 = vector.broadcast %cst_30 : f32 to vector<17x17xf32>
    %87 = arith.mulf %85, %86 : vector<17x17xf32>
    %cst_31 = arith.constant dense<0xFF800000> : vector<17xf32>
    %88 = vector.multi_reduction <maximumf>, %87, %cst_31 [1] : vector<17x17xf32> to vector<17xf32>
    %89 = vector.shape_cast %88 : vector<17xf32> to vector<17x1xf32>
    %90 = vector.broadcast %89 : vector<17x1xf32> to vector<17x17xf32>
    %91 = arith.subf %87, %90 : vector<17x17xf32>
    %92 = math.exp %91 : vector<17x17xf32>
    %cst_32 = arith.constant dense<0.000000e+00> : vector<17xf32>
    %93 = vector.multi_reduction <add>, %92, %cst_32 [1] : vector<17x17xf32> to vector<17xf32>
    %94 = vector.shape_cast %93 : vector<17xf32> to vector<17x1xf32>
    %95 = tpu.reciprocal %94 {approx = true} : vector<17x1xf32> -> vector<17x1xf32>
    %96 = vector.broadcast %95 : vector<17x1xf32> to vector<17x17xf32>
    %97 = arith.mulf %92, %96 : vector<17x17xf32>
    %cst_33 = arith.constant dense<0.000000e+00> : vector<17x8xf32>
    %98 = tpu.matmul %97, %84, %cst_33 {dimension_numbers = #tpu.dot_dimension_numbers<[1], [0], [0], [1], [0, 0, 1, 1], [], []>} : vector<17x17xf32>, vector<17x8xf32>, vector<17x8xf32> -> vector<17x8xf32>
    %99 = vector.extract_strided_slice %40 {offsets = [16, 0], sizes = [8, 32], strides = [1, 1]} : vector<32x32xf32> to vector<8x32xf32>
    %cst_34 = arith.constant dense<0.000000e+00> : vector<17x32xf32>
    %100 = tpu.matmul %98, %99, %cst_34 {dimension_numbers = #tpu.dot_dimension_numbers<[1], [0], [0], [1], [0, 0, 1, 1], [], []>} : vector<17x8xf32>, vector<8x32xf32>, vector<17x32xf32> -> vector<17x32xf32>
    %101 = arith.addf %81, %100 : vector<17x32xf32>
    %102 = vector.extract_strided_slice %38 {offsets = [0, 24], sizes = [17, 8], strides = [1, 1]} : vector<17x96xf32> to vector<17x8xf32>
    %103 = vector.extract_strided_slice %38 {offsets = [0, 56], sizes = [17, 8], strides = [1, 1]} : vector<17x96xf32> to vector<17x8xf32>
    %104 = vector.extract_strided_slice %38 {offsets = [0, 88], sizes = [17, 8], strides = [1, 1]} : vector<17x96xf32> to vector<17x8xf32>
    "tpu.trace_start"() <{level = 10 : i32, message = "qd,kd->qk"}> : () -> ()
    %cst_35 = arith.constant dense<0.000000e+00> : vector<17x17xf32>
    %105 = tpu.matmul %102, %103, %cst_35 {dimension_numbers = #tpu.dot_dimension_numbers<[1], [1], [0], [0], [0, 0, 1, 0], [], []>} : vector<17x8xf32>, vector<17x8xf32>, vector<17x17xf32> -> vector<17x17xf32>
    "tpu.trace_stop"() : () -> ()
    %cst_36 = arith.constant 0.353553385 : f32
    %106 = vector.broadcast %cst_36 : f32 to vector<17x17xf32>
    %107 = arith.mulf %105, %106 : vector<17x17xf32>
    %cst_37 = arith.constant dense<0xFF800000> : vector<17xf32>
    %108 = vector.multi_reduction <maximumf>, %107, %cst_37 [1] : vector<17x17xf32> to vector<17xf32>
    %109 = vector.shape_cast %108 : vector<17xf32> to vector<17x1xf32>
    %110 = vector.broadcast %109 : vector<17x1xf32> to vector<17x17xf32>
    %111 = arith.subf %107, %110 : vector<17x17xf32>
    %112 = math.exp %111 : vector<17x17xf32>
    %cst_38 = arith.constant dense<0.000000e+00> : vector<17xf32>
    %113 = vector.multi_reduction <add>, %112, %cst_38 [1] : vector<17x17xf32> to vector<17xf32>
    %114 = vector.shape_cast %113 : vector<17xf32> to vector<17x1xf32>
    %115 = tpu.reciprocal %114 {approx = true} : vector<17x1xf32> -> vector<17x1xf32>
    %116 = vector.broadcast %115 : vector<17x1xf32> to vector<17x17xf32>
    %117 = arith.mulf %112, %116 : vector<17x17xf32>
    %cst_39 = arith.constant dense<0.000000e+00> : vector<17x8xf32>
    %118 = tpu.matmul %117, %104, %cst_39 {dimension_numbers = #tpu.dot_dimension_numbers<[1], [0], [0], [1], [0, 0, 1, 1], [], []>} : vector<17x17xf32>, vector<17x8xf32>, vector<17x8xf32> -> vector<17x8xf32>
    %119 = vector.extract_strided_slice %40 {offsets = [24, 0], sizes = [8, 32], strides = [1, 1]} : vector<32x32xf32> to vector<8x32xf32>
    %cst_40 = arith.constant dense<0.000000e+00> : vector<17x32xf32>
    %120 = tpu.matmul %118, %119, %cst_40 {dimension_numbers = #tpu.dot_dimension_numbers<[1], [0], [0], [1], [0, 0, 1, 1], [], []>} : vector<17x8xf32>, vector<8x32xf32>, vector<17x32xf32> -> vector<17x32xf32>
    %121 = arith.addf %101, %120 : vector<17x32xf32>
    %122 = arith.addf %3, %121 : vector<17x32xf32>
    %123 = vector.broadcast %11 : vector<1x32xf32> to vector<17x32xf32>
    %124 = arith.addf %122, %123 : vector<17x32xf32>
    %cst_41 = arith.constant dense<0.000000e+00> : vector<17xf32>
    %125 = vector.multi_reduction <add>, %124, %cst_41 [1] : vector<17x32xf32> to vector<17xf32>
    %126 = vector.shape_cast %125 : vector<17xf32> to vector<17x1xf32>
    %cst_42 = arith.constant 3.200000e+01 : f32
    %127 = vector.broadcast %cst_42 : f32 to vector<17x1xf32>
    %128 = arith.divf %126, %127 : vector<17x1xf32>
    %129 = vector.broadcast %128 : vector<17x1xf32> to vector<17x32xf32>
    %130 = arith.subf %124, %129 : vector<17x32xf32>
    %131 = arith.mulf %130, %130 : vector<17x32xf32>
    %cst_43 = arith.constant dense<0.000000e+00> : vector<17xf32>
    %132 = vector.multi_reduction <add>, %131, %cst_43 [1] : vector<17x32xf32> to vector<17xf32>
    %133 = vector.shape_cast %132 : vector<17xf32> to vector<17x1xf32>
    %cst_44 = arith.constant 3.200000e+01 : f32
    %134 = vector.broadcast %cst_44 : f32 to vector<17x1xf32>
    %135 = arith.divf %133, %134 : vector<17x1xf32>
    %cst_45 = arith.constant 9.99999997E-7 : f32
    %136 = vector.broadcast %cst_45 : f32 to vector<17x1xf32>
    %137 = arith.addf %135, %136 : vector<17x1xf32>
    %138 = math.rsqrt %137 : vector<17x1xf32>
    %139 = vector.broadcast %138 : vector<17x1xf32> to vector<17x32xf32>
    %140 = arith.mulf %130, %139 : vector<17x32xf32>
    %141 = vector.broadcast %8 : vector<1x32xf32> to vector<17x32xf32>
    %142 = arith.mulf %140, %141 : vector<17x32xf32>
    %143 = vector.broadcast %9 : vector<1x32xf32> to vector<17x32xf32>
    %144 = arith.addf %142, %143 : vector<17x32xf32>
    %c0_46 = arith.constant 0 : index
    %c0_47 = arith.constant 0 : index
    %c0_48 = arith.constant 0 : index
    %145 = vector.load %arg9[%c0_46, %c0_47, %c0_48] : memref<1x32x128xf32, #tpu.memory_space<vmem>>, vector<1x32x128xf32>
    %146 = vector.shape_cast %145 : vector<1x32x128xf32> to vector<32x128xf32>
    %cst_49 = arith.constant dense<0.000000e+00> : vector<17x128xf32>
    %147 = tpu.matmul %144, %146, %cst_49 {dimension_numbers = #tpu.dot_dimension_numbers<[1], [0], [0], [1], [0, 0, 1, 1], [], []>} : vector<17x32xf32>, vector<32x128xf32>, vector<17x128xf32> -> vector<17x128xf32>
    %148 = vector.broadcast %12 : vector<1x128xf32> to vector<17x128xf32>
    %149 = arith.addf %147, %148 : vector<17x128xf32>
    %150 = arith.mulf %149, %149 : vector<17x128xf32>
    %151 = arith.mulf %149, %150 : vector<17x128xf32>
    %cst_50 = arith.constant 4.471500e-02 : f32
    %152 = vector.broadcast %cst_50 : f32 to vector<17x128xf32>
    %153 = arith.mulf %152, %151 : vector<17x128xf32>
    %154 = arith.addf %149, %153 : vector<17x128xf32>
    %cst_51 = arith.constant 0.797884583 : f32
    %155 = vector.broadcast %cst_51 : f32 to vector<17x128xf32>
    %156 = arith.mulf %155, %154 : vector<17x128xf32>
    %157 = math.tanh %156 : vector<17x128xf32>
    %cst_52 = arith.constant 1.000000e+00 : f32
    %158 = vector.broadcast %cst_52 : f32 to vector<17x128xf32>
    %159 = arith.addf %158, %157 : vector<17x128xf32>
    %cst_53 = arith.constant 5.000000e-01 : f32
    %160 = vector.broadcast %cst_53 : f32 to vector<17x128xf32>
    %161 = arith.mulf %160, %159 : vector<17x128xf32>
    %162 = arith.mulf %149, %161 : vector<17x128xf32>
    %c0_54 = arith.constant 0 : index
    %c0_55 = arith.constant 0 : index
    %c0_56 = arith.constant 0 : index
    %163 = vector.load %arg10[%c0_54, %c0_55, %c0_56] : memref<1x128x32xf32, #tpu.memory_space<vmem>>, vector<1x128x32xf32>
    %164 = vector.shape_cast %163 : vector<1x128x32xf32> to vector<128x32xf32>
    %cst_57 = arith.constant dense<0.000000e+00> : vector<17x32xf32>
    %165 = tpu.matmul %162, %164, %cst_57 {dimension_numbers = #tpu.dot_dimension_numbers<[1], [0], [0], [1], [0, 0, 1, 1], [], []>} : vector<17x128xf32>, vector<128x32xf32>, vector<17x32xf32> -> vector<17x32xf32>
    %166 = arith.addf %124, %165 : vector<17x32xf32>
    %167 = vector.broadcast %13 : vector<1x32xf32> to vector<17x32xf32>
    %168 = arith.addf %166, %167 : vector<17x32xf32>
    %c0_58 = arith.constant 0 : index
    %c0_59 = arith.constant 0 : index
    %169 = vector.load %arg13[%c0_58, %c0_59] : memref<17x32xf32, #tpu.memory_space<vmem>>, vector<17x32xf32>
    tpu.vector_store %arg13[%c0_58, %c0_59], %168 {strides = array<i32>} : memref<17x32xf32, #tpu.memory_space<vmem>>, vector<17x32xf32>,
    %c1_i32 = arith.constant 1 : i32
    %170 = arith.cmpi eq, %arg1, %c1_i32 : i32
    %171 = arith.extui %170 : i1 to i32
    %c0_i32_60 = arith.constant 0 : i32
    %172 = arith.cmpi ne, %171, %c0_i32_60 : i32
    scf.if %172 {
      %c0_61 = arith.constant 0 : index
      %c0_62 = arith.constant 0 : index
      %173 = vector.load %arg5[%c0_61, %c0_62] : memref<8x128xf32, #tpu.memory_space<vmem>>, vector<8x128xf32>
      %174 = vector.extract_strided_slice %173 {offsets = [0, 0], sizes = [1, 32], strides = [1, 1]} : vector<8x128xf32> to vector<1x32xf32>
      %175 = vector.extract_strided_slice %173 {offsets = [1, 0], sizes = [1, 32], strides = [1, 1]} : vector<8x128xf32> to vector<1x32xf32>
      %176 = vector.extract_strided_slice %173 {offsets = [2, 0], sizes = [1, 64], strides = [1, 1]} : vector<8x128xf32> to vector<1x64xf32>
      %cst_63 = arith.constant dense<0.000000e+00> : vector<17xf32>
      %177 = vector.multi_reduction <add>, %168, %cst_63 [1] : vector<17x32xf32> to vector<17xf32>
      %178 = vector.shape_cast %177 : vector<17xf32> to vector<17x1xf32>
      %cst_64 = arith.constant 3.200000e+01 : f32
      %179 = vector.broadcast %cst_64 : f32 to vector<17x1xf32>
      %180 = arith.divf %178, %179 : vector<17x1xf32>
      %181 = vector.broadcast %180 : vector<17x1xf32> to vector<17x32xf32>
      %182 = arith.subf %168, %181 : vector<17x32xf32>
      %183 = arith.mulf %182, %182 : vector<17x32xf32>
      %cst_65 = arith.constant dense<0.000000e+00> : vector<17xf32>
      %184 = vector.multi_reduction <add>, %183, %cst_65 [1] : vector<17x32xf32> to vector<17xf32>
      %185 = vector.shape_cast %184 : vector<17xf32> to vector<17x1xf32>
      %cst_66 = arith.constant 3.200000e+01 : f32
      %186 = vector.broadcast %cst_66 : f32 to vector<17x1xf32>
      %187 = arith.divf %185, %186 : vector<17x1xf32>
      %cst_67 = arith.constant 9.99999997E-7 : f32
      %188 = vector.broadcast %cst_67 : f32 to vector<17x1xf32>
      %189 = arith.addf %187, %188 : vector<17x1xf32>
      %190 = math.rsqrt %189 : vector<17x1xf32>
      %191 = vector.broadcast %190 : vector<17x1xf32> to vector<17x32xf32>
      %192 = arith.mulf %182, %191 : vector<17x32xf32>
      %193 = vector.broadcast %174 : vector<1x32xf32> to vector<17x32xf32>
      %194 = arith.mulf %192, %193 : vector<17x32xf32>
      %195 = vector.broadcast %175 : vector<1x32xf32> to vector<17x32xf32>
      %196 = arith.addf %194, %195 : vector<17x32xf32>
      %197 = vector.extract_strided_slice %196 {offsets = [0, 0], sizes = [1, 32], strides = [1, 1]} : vector<17x32xf32> to vector<1x32xf32>
      %c0_68 = arith.constant 0 : index
      %c0_69 = arith.constant 0 : index
      %198 = vector.load %arg6[%c0_68, %c0_69] : memref<32x64xf32, #tpu.memory_space<vmem>>, vector<32x64xf32>
      %cst_70 = arith.constant dense<0.000000e+00> : vector<1x64xf32>
      %199 = tpu.matmul %197, %198, %cst_70 {dimension_numbers = #tpu.dot_dimension_numbers<[1], [0], [0], [1], [0, 0, 1, 1], [], []>} : vector<1x32xf32>, vector<32x64xf32>, vector<1x64xf32> -> vector<1x64xf32>
      %200 = arith.addf %199, %176 : vector<1x64xf32>
      %c0_71 = arith.constant 0 : index
      %c0_72 = arith.constant 0 : index
      %c0_73 = arith.constant 0 : index
      %201 = vector.load %arg12[%c0_71, %c0_72, %c0_73] : memref<1x1x64xf32, #tpu.memory_space<vmem>>, vector<1x1x64xf32>
      %202 = vector.shape_cast %201 : vector<1x1x64xf32> to vector<1x64xf32>
      %203 = vector.shape_cast %200 : vector<1x64xf32> to vector<1x1x64xf32>
      tpu.vector_store %arg12[%c0_71, %c0_72, %c0_73], %203 {strides = array<i32>} : memref<1x1x64xf32, #tpu.memory_space<vmem>>, vector<1x1x64xf32>,
    } else {
    }
    return
  }
  func.func @transform_0(%arg0: i32, %arg1: i32) -> (i32, i32, i32) {
    %c0_i32 = arith.constant 0 : i32
    %c0_i32_0 = arith.constant 0 : i32
    %c0_i32_1 = arith.constant 0 : i32
    return %arg0, %c0_i32, %c0_i32_0 : i32, i32, i32
  }
  func.func @transform_1(%arg0: i32, %arg1: i32) -> (i32, i32) {
    %c0_i32 = arith.constant 0 : i32
    %c0_i32_0 = arith.constant 0 : i32
    %c0_i32_1 = arith.constant 0 : i32
    return %c0_i32, %c0_i32_0 : i32, i32
  }
  func.func @transform_2(%arg0: i32, %arg1: i32) -> (i32, i32) {
    %c0_i32 = arith.constant 0 : i32
    %c0_i32_0 = arith.constant 0 : i32
    %c0_i32_1 = arith.constant 0 : i32
    return %c0_i32, %c0_i32_0 : i32, i32
  }
  func.func @transform_3(%arg0: i32, %arg1: i32) -> (i32, i32) {
    %c0_i32 = arith.constant 0 : i32
    %c0_i32_0 = arith.constant 0 : i32
    %c0_i32_1 = arith.constant 0 : i32
    return %c0_i32, %c0_i32_0 : i32, i32
  }
  func.func @transform_4(%arg0: i32, %arg1: i32) -> (i32, i32) {
    %c0_i32 = arith.constant 0 : i32
    %c0_i32_0 = arith.constant 0 : i32
    %c0_i32_1 = arith.constant 0 : i32
    return %c0_i32, %c0_i32_0 : i32, i32
  }
  func.func @transform_5(%arg0: i32, %arg1: i32) -> (i32, i32, i32) {
    %c0_i32 = arith.constant 0 : i32
    %c0_i32_0 = arith.constant 0 : i32
    %c0_i32_1 = arith.constant 0 : i32
    return %arg1, %c0_i32, %c0_i32_0 : i32, i32, i32
  }
  func.func @transform_6(%arg0: i32, %arg1: i32) -> (i32, i32, i32) {
    %c0_i32 = arith.constant 0 : i32
    %c0_i32_0 = arith.constant 0 : i32
    %c0_i32_1 = arith.constant 0 : i32
    return %arg1, %c0_i32, %c0_i32_0 : i32, i32, i32
  }
  func.func @transform_7(%arg0: i32, %arg1: i32) -> (i32, i32, i32) {
    %c0_i32 = arith.constant 0 : i32
    %c0_i32_0 = arith.constant 0 : i32
    %c0_i32_1 = arith.constant 0 : i32
    return %arg1, %c0_i32, %c0_i32_0 : i32, i32, i32
  }
  func.func @transform_8(%arg0: i32, %arg1: i32) -> (i32, i32, i32) {
    %c0_i32 = arith.constant 0 : i32
    %c0_i32_0 = arith.constant 0 : i32
    %c0_i32_1 = arith.constant 0 : i32
    return %arg1, %c0_i32, %c0_i32_0 : i32, i32, i32
  }
  func.func @transform_9(%arg0: i32, %arg1: i32) -> (i32, i32, i32) {
    %c0_i32 = arith.constant 0 : i32
    %c0_i32_0 = arith.constant 0 : i32
    %c0_i32_1 = arith.constant 0 : i32
    return %arg1, %c0_i32, %c0_i32_0 : i32, i32, i32
  }
  func.func @transform_10(%arg0: i32, %arg1: i32) -> (i32, i32, i32) {
    %c0_i32 = arith.constant 0 : i32
    %c0_i32_0 = arith.constant 0 : i32
    %c0_i32_1 = arith.constant 0 : i32
    return %arg0, %c0_i32, %c0_i32_0 : i32, i32, i32
  }
}

</mosaic_0001>

<bundles_post_ra>
// kernel: puzzle_vit_forward.3
= control target key start
LH: loop header
LB: loop body
LE: loop exit
PB: predicated region body
PF: predicated region fallthrough
CT: control target
= control target key end

     0   :  { %v723_v0 = vmov 0.0   ;;  %vm724_vm0 = vmmov 0   ;;  %vm40_vm1 = vcmask 523264   ;;  %v36_v39 = vlaneseq  ;;  %s1086_s1 = inlined_call_operand.vmem [shape: f32[64,128], index: 1, kind: input, shape index: {}]   ;;  %s1087_s2 = inlined_call_operand.vmem [shape: f32[128,128], index: 2, kind: input, shape index: {}]   ;;  %s1088_s0 = inlined_call_operand.vmem [shape: f32[2,64], index: 0, kind: input, shape index: {}]   ;;  %s1089_s3 = inlined_call_operand.vmem [shape: f32[128,128], index: 3, kind: input, shape index: {}]   ;;  %s1090_s6 = inlined_call_operand.vmem [shape: f32[8,128], index: 6, kind: input, shape index: {}]   ;;  %s1091_s4 = inlined_call_operand.vmem [shape: f32[128,128], index: 4, kind: input, shape index: {}]   ;;  %s1092_s5 = inlined_call_operand.vmem [shape: f32[128,81], index: 5, kind: input, shape index: {}]   ;;  %s1093_s7 = inlined_call_operand.vmem [shape: f32[2,81], index: 7, kind: output, shape index: {}]  }
   0x1   :  { %562 = vmatprep.subr.mxu0 %v723_v0  ;;  %v35_v1 = vld [vmem:[%s1086_s1 + $0x38] sm:$0xff]  ;;  %v34_v2 = vld [vmem:[%s1086_s1 + $0x30] sm:$0xff]  ;;  %578 = vmatprep.mubr.msk.f32.mxu0 %vm724_vm0, %v723_v0  ;;  %v33_v3 = vld [vmem:[%s1086_s1 + $0x28] sm:$0xff]  ;;  %vm478_vm2 = vcmask 656384  }
   0x2   :  { %563 = vmatpush3.msra.mxu0 %v35_v1  ;;  %581 = vmatprep.subr.mxu1 %v723_v0  ;;  %v130_v4 = vld [vmem:[%s1087_s2 + $0x78] sm:$0xff]  ;;  %v129_v5 = vld [vmem:[%s1087_s2 + $0x70] sm:$0xff]  ;;  %v32_v6 = vld [vmem:[%s1086_s1 + $0x20] sm:$0xff]  ;;  %v924_v40 = vshrl.u32 %v36_v39, 7 }
   0x3   :  { %564 = vmatprep.subr.mxu0 %v723_v0  ;;  %613 = vmatprep.mubr.msk.f32.mxu1 %vm724_vm0, %v723_v0  ;;  %v128_v7 = vld [vmem:[%s1087_s2 + $0x68] sm:$0xff]  ;;  %v31_v8 = vld [vmem:[%s1086_s1 + $0x18] sm:$0xff]  ;;  %v127_v9 = vld [vmem:[%s1087_s2 + $0x60] sm:$0xff] }
   0x4   :  { %565 = vmatpush3.msra.mxu0 %v34_v2  ;;  %582 = vmatpush3.msra.mxu1 %v130_v4  ;;  %v30_v10 = vld [vmem:[%s1086_s1 + $0x10] sm:$0xff]  ;;  %v126_v11 = vld [vmem:[%s1087_s2 + $0x58] sm:$0xff]  ;;  %v29_v12 = vld [vmem:[%s1086_s1 + $0x8] sm:$0xff]  ;;  %v38_v41 = vsub.s32 0, %v924_v40  ;;  %v133_v1 = vsub.s32 1, %v924_v40 }
   0x5   :  { %566 = vmatprep.subr.mxu0 %v723_v0  ;;  %583 = vmatprep.subr.mxu1 %v723_v0  ;;  %v125_v13 = vld [vmem:[%s1087_s2 + $0x50] sm:$0xff]  ;;  %v28_v14 = vld [vmem:[%s1086_s1] sm:$0xff]  ;;  %v124_v16 = vld [vmem:[%s1087_s2 + $0x48] sm:$0xff] }
   0x6   :  { %567 = vmatpush3.msra.mxu0 %v33_v3  ;;  %584 = vmatpush3.msra.mxu1 %v129_v5  ;;  %v27_v15 = vld [vmem:[%s1088_s0] sm:$0x3]  ;;  %v122_v18 = vld [vmem:[%s1087_s2 + $0x38] sm:$0xff]  ;;  %v121_v19 = vld [vmem:[%s1087_s2 + $0x30] sm:$0xff] }
   0x7   :  { %568 = vmatprep.subr.mxu0 %v723_v0  ;;  %585 = vmatprep.subr.mxu1 %v723_v0  ;;  %v123_v17 = vld [vmem:[%s1087_s2 + $0x40] sm:$0xff]  ;;  %v120_v20 = vld [vmem:[%s1087_s2 + $0x28] sm:$0xff]  ;;  %v118_v22 = vld [vmem:[%s1087_s2 + $0x18] sm:$0xff] }
   0x8   :  { %569 = vmatpush3.msra.mxu0 %v32_v6  ;;  %586 = vmatpush3.msra.mxu1 %v128_v7  ;;  %v119_v21 = vld [vmem:[%s1087_s2 + $0x20] sm:$0xff]  ;;  %v117_v23 = vld [vmem:[%s1087_s2 + $0x10] sm:$0xff]  ;;  %v116_v24 = vld [vmem:[%s1087_s2 + $0x8] sm:$0xff] }
   0x9   :  { %570 = vmatprep.subr.mxu0 %v723_v0  ;;  %587 = vmatprep.subr.mxu1 %v723_v0  ;;  %v115_v25 = vld [vmem:[%s1087_s2] sm:$0xff]  ;;  %v221_v26 = vld [vmem:[%s1089_s3 + $0x78] sm:$0xff]  ;;  %v220_v27 = vld [vmem:[%s1089_s3 + $0x70] sm:$0xff] }
   0xa   :  { %571 = vmatpush3.msra.mxu0 %v31_v8  ;;  %588 = vmatpush3.msra.mxu1 %v127_v9  ;;  %v219_v28 = vld [vmem:[%s1089_s3 + $0x68] sm:$0xff]  ;;  %v218_v29 = vld [vmem:[%s1089_s3 + $0x60] sm:$0xff]  ;;  %v217_v30 = vld [vmem:[%s1089_s3 + $0x58] sm:$0xff] }
   0xb   :  { %572 = vmatprep.subr.mxu0 %v723_v0  ;;  %589 = vmatprep.subr.mxu1 %v723_v0  ;;  %v216_v31 = vld [vmem:[%s1089_s3 + $0x50] sm:$0xff]  ;;  %v215_v32 = vld [vmem:[%s1089_s3 + $0x48] sm:$0xff]  ;;  %v214_v33 = vld [vmem:[%s1089_s3 + $0x40] sm:$0xff] }
   0xc   :  { %573 = vmatpush3.msra.mxu0 %v30_v10  ;;  %590 = vmatpush3.msra.mxu1 %v126_v11  ;;  %v213_v34 = vld [vmem:[%s1089_s3 + $0x38] sm:$0xff]  ;;  %v212_v35 = vld [vmem:[%s1089_s3 + $0x30] sm:$0xff]  ;;  %v211_v36 = vld [vmem:[%s1089_s3 + $0x28] sm:$0xff] }
   0xd   :  { %574 = vmatprep.subr.mxu0 %v723_v0  ;;  %591 = vmatprep.subr.mxu1 %v723_v0  ;;  %v210_v37 = vld [vmem:[%s1089_s3 + $0x20] sm:$0xff]  ;;  %v209_v38 = vld [vmem:[%s1089_s3 + $0x18] sm:$0xff]  ;;  %v208_v48 = vld [vmem:[%s1089_s3 + $0x10] sm:$0xff] }
   0xe   :  { %575 = vmatpush3.msra.mxu0 %v29_v12  ;;  %592 = vmatpush3.msra.mxu1 %v125_v13  ;;  %v930_v42 = vld [vmem:[%s1090_s6] sm:$0xff]  ;;  %v207_v49 = vld [vmem:[%s1089_s3 + $0x8] sm:$0xff]  ;;  %v312_v51 = vld [vmem:[%s1091_s4 + $0x78] sm:$0xff] }
   0xf   :  { %576 = vmatprep.subr.mxu0 %v723_v0  ;;  %593 = vmatprep.subr.mxu1 %v723_v0  ;;  %v39_v43 = vrot.slane %v930_v42, %v38_v41  ;;  %v206_v50 = vld [vmem:[%s1089_s3] sm:$0xff]  ;;  %v311_v52 = vld [vmem:[%s1091_s4 + $0x70] sm:$0xff]  ;;  %v310_v53 = vld [vmem:[%s1091_s4 + $0x68] sm:$0xff]  ;;  %v134_v2 = vrot.slane %v930_v42, %v133_v1 }
  0x10   :  { %577 = vmatpush3.msra.mxu0 %v28_v14  ;;  %594 = vmatpush3.msra.mxu1 %v124_v16  ;;  %v309_v54 = vld [vmem:[%s1091_s4 + $0x60] sm:$0xff]  ;;  %v308_v55 = vld [vmem:[%s1091_s4 + $0x58] sm:$0xff]  ;;  %v307_v56 = vld [vmem:[%s1091_s4 + $0x50] sm:$0xff] }
  0x11   :  { %579 = vmatmul.mubr.msk.f32.vlgmr.msra.gmra.mxu0 %vm40_vm1, %v27_v15  ;;  %595 = vmatprep.subr.mxu1 %v723_v0  ;;  %v306_v57 = vld [vmem:[%s1091_s4 + $0x48] sm:$0xff]  ;;  %v305_v58 = vld [vmem:[%s1091_s4 + $0x40] sm:$0xff]  ;;  %v304_v59 = vld [vmem:[%s1091_s4 + $0x38] sm:$0xff] }
  0x12   :  { %616 = vmatprep.subr.mxu0 %v723_v0  ;;  %596 = vmatpush3.msra.mxu1 %v123_v17  ;;  %v303_v60 = vld [vmem:[%s1091_s4 + $0x30] sm:$0xff]  ;;  %v302_v61 = vld [vmem:[%s1091_s4 + $0x28] sm:$0xff]  ;;  %v301_v62 = vld [vmem:[%s1091_s4 + $0x20] sm:$0xff] }
  0x13   :  { %648 = vmatprep.mubr.msk.f32.mxu0 %vm724_vm0, %v723_v0  ;;  %597 = vmatprep.subr.mxu1 %v723_v0  ;;  %v300_v63 = vld [vmem:[%s1091_s4 + $0x18] sm:$0xff]  ;;  %v299_v7 = vld [vmem:[%s1091_s4 + $0x10] sm:$0xff]  ;;  %v298_v8 = vld [vmem:[%s1091_s4 + $0x8] sm:$0xff] }
  0x14   :  { %598 = vmatpush3.msra.mxu1 %v122_v18  ;;  %617 = vmatpush3.msra.mxu0 %v221_v26  ;;  %v297_v9 = vld [vmem:[%s1091_s4] sm:$0xff]  ;;  %v403_v10 = vld [vmem:[%s1092_s5 + $0x78] sm:$0xff]  ;;  %v402_v11 = vld [vmem:[%s1092_s5 + $0x70] sm:$0xff] }
  0x15   :  { %599 = vmatprep.subr.mxu1 %v723_v0  ;;  %618 = vmatprep.subr.mxu0 %v723_v0  ;;  %v401_v12 = vld [vmem:[%s1092_s5 + $0x68] sm:$0xff]  ;;  %v400_v13 = vld [vmem:[%s1092_s5 + $0x60] sm:$0xff]  ;;  %v399_v14 = vld [vmem:[%s1092_s5 + $0x58] sm:$0xff] }
  0x16   :  { %600 = vmatpush3.msra.mxu1 %v121_v19  ;;  %619 = vmatpush3.msra.mxu0 %v220_v27  ;;  %v398_v15 = vld [vmem:[%s1092_s5 + $0x50] sm:$0xff]  ;;  %v397_v16 = vld [vmem:[%s1092_s5 + $0x48] sm:$0xff]  ;;  %v396_v17 = vld [vmem:[%s1092_s5 + $0x40] sm:$0xff] }
  0x17   :  { %601 = vmatprep.subr.mxu1 %v723_v0  ;;  %620 = vmatprep.subr.mxu0 %v723_v0  ;;  %v395_v18 = vld [vmem:[%s1092_s5 + $0x38] sm:$0xff]  ;;  %v394_v19 = vld [vmem:[%s1092_s5 + $0x30] sm:$0xff] }
  0x18   :  { %602 = vmatpush3.msra.mxu1 %v120_v20  ;;  %621 = vmatpush3.msra.mxu0 %v219_v28  ;;  %v393_v20 = vld [vmem:[%s1092_s5 + $0x28] sm:$0xff] }
  0x19   :  { %603 = vmatprep.subr.mxu1 %v723_v0  ;;  %622 = vmatprep.subr.mxu0 %v723_v0 }
  0x1a   :  { %604 = vmatpush3.msra.mxu1 %v119_v21  ;;  %623 = vmatpush3.msra.mxu0 %v218_v29  ;;  %v392_v21 = vld [vmem:[%s1092_s5 + $0x20] sm:$0xff]  ;;  %v390_v29 = vld [vmem:[%s1092_s5 + $0x10] sm:$0xff] }
  0x1b   :  { %605 = vmatprep.subr.mxu1 %v723_v0  ;;  %624 = vmatprep.subr.mxu0 %v723_v0 }
  0x1c   :  { %606 = vmatpush3.msra.mxu1 %v118_v22  ;;  %625 = vmatpush3.msra.mxu0 %v217_v30  ;;  %v391_v22 = vld [vmem:[%s1092_s5 + $0x18] sm:$0xff]  ;;  %v389_v30 = vld [vmem:[%s1092_s5 + $0x8] sm:$0xff] }
  0x1d   :  { %607 = vmatprep.subr.mxu1 %v723_v0  ;;  %626 = vmatprep.subr.mxu0 %v723_v0 }
  0x1e   :  { %608 = vmatpush3.msra.mxu1 %v117_v23  ;;  %627 = vmatpush3.msra.mxu0 %v216_v31  ;;  %v224_v23 = vsub.s32 2, %v924_v40  ;;  %v388_v31 = vld [vmem:[%s1092_s5] sm:$0xff] }
  0x1f   :  { %609 = vmatprep.subr.mxu1 %v723_v0  ;;  %628 = vmatprep.subr.mxu0 %v723_v0 }
  0x20   :  { %610 = vmatpush3.msra.mxu1 %v116_v24  ;;  %629 = vmatpush3.msra.mxu0 %v215_v32  ;;  %v225_v24 = vrot.slane %v930_v42, %v224_v23  ;;  %v315_v32 = vsub.s32 3, %v924_v40 }
  0x21   :  { %611 = vmatprep.subr.mxu1 %v723_v0  ;;  %630 = vmatprep.subr.mxu0 %v723_v0 }
  0x22   :  { %612 = vmatpush3.msra.mxu1 %v115_v25  ;;  %631 = vmatpush3.msra.mxu0 %v214_v33  ;;  %v316_v33 = vrot.slane %v930_v42, %v315_v32 }
  0x23   :  { %651 = vmatprep.subr.mxu1 %v723_v0  ;;  %632 = vmatprep.subr.mxu0 %v723_v0 }
  0x24   :  { %633 = vmatpush3.msra.mxu0 %v213_v34 }
  0x25   :  { %634 = vmatprep.subr.mxu0 %v723_v0 }
  0x26   :  { %635 = vmatpush3.msra.mxu0 %v212_v35 }
  0x27   :  { %636 = vmatprep.subr.mxu0 %v723_v0 }
  0x28   :  { %637 = vmatpush3.msra.mxu0 %v211_v36 }
  0x29   :  { %638 = vmatprep.subr.mxu0 %v723_v0 }
  0x2a   :  { %639 = vmatpush3.msra.mxu0 %v210_v37 }
  0x2b   :  { %640 = vmatprep.subr.mxu0 %v723_v0 }
  0x2c   :  { %641 = vmatpush3.msra.mxu0 %v209_v38  ;;  %v406_v38 = vsub.s32 4, %v924_v40 }
  0x2d   :  { %642 = vmatprep.subr.mxu0 %v723_v0 }
  0x2e   :  { %643 = vmatpush3.msra.mxu0 %v208_v48  ;;  %v407_v39 = vrot.slane %v930_v42, %v406_v38 }
  0x2f   :  { %644 = vmatprep.subr.mxu0 %v723_v0 }
  0x30   :  { %645 = vmatpush3.msra.mxu0 %v207_v49 }
  0x31   :  { %646 = vmatprep.subr.mxu0 %v723_v0 }
  0x32   :  { %647 = vmatpush3.msra.mxu0 %v206_v50 }
  0x33   :  { %686 = vmatprep.subr.mxu0 %v723_v0 }
  0xd1   :  { %v110_v44 = vpop.f32.mrf.mxu0 }
  0xd2   :  { %v111_v45 = vadd.f32 %v110_v44, %v39_v43 }
  0xd3   :  { %v580_v46 = vpop.f32.mrf.mxu0 }
  0xd4   :  { %v114_v47 = vmax.f32 %v111_v45, 0.0 }
  0xd6   :  { %614 = vmatmul.mubr.f32.vlgmr.msra.gmra.mxu1 %v114_v47 }
  0xd7   :  { %683 = vmatprep.mubr.msk.f32.mxu1 %vm724_vm0, %v723_v0  ;;  %652 = vmatpush3.msra.mxu1 %v312_v51 }
  0xd8   :  { %653 = vmatprep.subr.mxu1 %v723_v0 }
  0xd9   :  { %654 = vmatpush3.msra.mxu1 %v311_v52 }
  0xda   :  { %655 = vmatprep.subr.mxu1 %v723_v0 }
  0xdb   :  { %656 = vmatpush3.msra.mxu1 %v310_v53 }
  0xdc   :  { %657 = vmatprep.subr.mxu1 %v723_v0 }
  0xdd   :  { %658 = vmatpush3.msra.mxu1 %v309_v54 }
  0xde   :  { %659 = vmatprep.subr.mxu1 %v723_v0 }
  0xdf   :  { %660 = vmatpush3.msra.mxu1 %v308_v55 }
  0xe0   :  { %661 = vmatprep.subr.mxu1 %v723_v0 }
  0xe1   :  { %662 = vmatpush3.msra.mxu1 %v307_v56 }
  0xe2   :  { %663 = vmatprep.subr.mxu1 %v723_v0 }
  0xe3   :  { %664 = vmatpush3.msra.mxu1 %v306_v57 }
  0xe4   :  { %665 = vmatprep.subr.mxu1 %v723_v0 }
  0xe5   :  { %666 = vmatpush3.msra.mxu1 %v305_v58 }
  0xe6   :  { %667 = vmatprep.subr.mxu1 %v723_v0 }
  0xe7   :  { %668 = vmatpush3.msra.mxu1 %v304_v59 }
  0xe8   :  { %669 = vmatprep.subr.mxu1 %v723_v0 }
  0xe9   :  { %670 = vmatpush3.msra.mxu1 %v303_v60 }
  0xea   :  { %671 = vmatprep.subr.mxu1 %v723_v0 }
  0xeb   :  { %672 = vmatpush3.msra.mxu1 %v302_v61 }
  0xec   :  { %673 = vmatprep.subr.mxu1 %v723_v0 }
  0xed   :  { %674 = vmatpush3.msra.mxu1 %v301_v62 }
  0xee   :  { %675 = vmatprep.subr.mxu1 %v723_v0 }
  0xef   :  { %676 = vmatpush3.msra.mxu1 %v300_v63 }
  0xf0   :  { %677 = vmatprep.subr.mxu1 %v723_v0 }
  0xf1   :  { %678 = vmatpush3.msra.mxu1 %v299_v7 }
  0xf2   :  { %679 = vmatprep.subr.mxu1 %v723_v0 }
  0xf3   :  { %680 = vmatpush3.msra.mxu1 %v298_v8 }
  0xf4   :  { %681 = vmatprep.subr.mxu1 %v723_v0 }
  0xf5   :  { %682 = vmatpush3.msra.mxu1 %v297_v9 }
 0x196   :  { %v201_v3 = vpop.f32.mrf.mxu1 }
 0x197   :  { %v202_v4 = vadd.f32 %v201_v3, %v134_v2 }
 0x198   :  { %v615_v5 = vpop.f32.mrf.mxu1 }
 0x199   :  { %v205_v6 = vmax.f32 %v202_v4, 0.0 }
 0x19b   :  { %649 = vmatmul.mubr.f32.vlgmr.msra.gmra.mxu0 %v205_v6 }
 0x19c   :  { %718 = vmatprep.mubr.msk.f32.mxu0 %vm724_vm0, %v723_v0  ;;  %687 = vmatpush3.msra.mxu0 %v403_v10 }
 0x19d   :  { %688 = vmatprep.subr.mxu0 %v723_v0 }
 0x19e   :  { %689 = vmatpush3.msra.mxu0 %v402_v11 }
 0x19f   :  { %690 = vmatprep.subr.mxu0 %v723_v0 }
 0x1a0   :  { %691 = vmatpush3.msra.mxu0 %v401_v12 }
 0x1a1   :  { %692 = vmatprep.subr.mxu0 %v723_v0 }
 0x1a2   :  { %693 = vmatpush3.msra.mxu0 %v400_v13 }
 0x1a3   :  { %694 = vmatprep.subr.mxu0 %v723_v0 }
 0x1a4   :  { %695 = vmatpush3.msra.mxu0 %v399_v14 }
 0x1a5   :  { %696 = vmatprep.subr.mxu0 %v723_v0 }
 0x1a6   :  { %697 = vmatpush3.msra.mxu0 %v398_v15 }
 0x1a7   :  { %698 = vmatprep.subr.mxu0 %v723_v0 }
 0x1a8   :  { %699 = vmatpush3.msra.mxu0 %v397_v16 }
 0x1a9   :  { %700 = vmatprep.subr.mxu0 %v723_v0 }
 0x1aa   :  { %701 = vmatpush3.msra.mxu0 %v396_v17 }
 0x1ab   :  { %702 = vmatprep.subr.mxu0 %v723_v0 }
 0x1ac   :  { %703 = vmatpush3.msra.mxu0 %v395_v18 }
 0x1ad   :  { %704 = vmatprep.subr.mxu0 %v723_v0 }
 0x1ae   :  { %705 = vmatpush3.msra.mxu0 %v394_v19 }
 0x1af   :  { %706 = vmatprep.subr.mxu0 %v723_v0 }
 0x1b0   :  { %707 = vmatpush3.msra.mxu0 %v393_v20 }
 0x1b1   :  { %708 = vmatprep.subr.mxu0 %v723_v0 }
 0x1b2   :  { %709 = vmatpush3.msra.mxu0 %v392_v21 }
 0x1b3   :  { %710 = vmatprep.subr.mxu0 %v723_v0 }
 0x1b4   :  { %711 = vmatpush3.msra.mxu0 %v391_v22 }
 0x1b5   :  { %712 = vmatprep.subr.mxu0 %v723_v0 }
 0x1b6   :  { %713 = vmatpush3.msra.mxu0 %v390_v29 }
 0x1b7   :  { %714 = vmatprep.subr.mxu0 %v723_v0 }
 0x1b8   :  { %715 = vmatpush3.msra.mxu0 %v389_v30 }
 0x1b9   :  { %716 = vmatprep.subr.mxu0 %v723_v0 }
 0x1ba   :  { %717 = vmatpush3.msra.mxu0 %v388_v31 }
 0x25b   :  { %v292_v25 = vpop.f32.mrf.mxu0 }
 0x25c   :  { %v293_v26 = vadd.f32 %v292_v25, %v225_v24 }
 0x25d   :  { %v650_v27 = vpop.f32.mrf.mxu0 }
 0x25e   :  { %v296_v28 = vmax.f32 %v293_v26, 0.0 }
 0x260   :  { %684 = vmatmul.mubr.f32.vlgmr.msra.gmra.mxu1 %v296_v28 }
 0x320   :  { %v383_v34 = vpop.f32.mrf.mxu1 }
 0x321   :  { %v384_v35 = vadd.f32 %v383_v34, %v316_v33 }
 0x322   :  { %v685_v36 = vpop.f32.mrf.mxu1 }
 0x323   :  { %v387_v37 = vmax.f32 %v384_v35, 0.0 }
 0x325   :  { %719 = vmatmul.mubr.f32.vlgmr.msra.gmra.mxu0 %v387_v37 }
 0x3e5   :  { %v474_v41 = vpop.f32.mrf.mxu0 }
 0x3e6   :  { %v475_v0 = vadd.f32 %v474_v41, %v407_v39 }
 0x3e7   :  { %v720_v43 = vpop.f32.mrf.mxu0 }
 0x3e8   :  { %479 = vst.msk [vmem:[%s1093_s7] sm:$0x3] %vm478_vm2, %v475_v0 }

// kernel: puzzle_vit_forward.2
= control target key start
LH: loop header
LB: loop body
LE: loop exit
PB: predicated region body
PF: predicated region fallthrough
CT: control target
= control target key end

     0   :  { %s3326_s13 = smov 0   ;;  %s3328_s14 = smov 0   ;;  %s3952_s0 = inlined_call_operand.vmem [shape: f32[2,17,192], index: 0, kind: input, shape index: {}]   ;;  %s3953_s1 = inlined_call_operand.vmem [shape: f32[192,32], index: 1, kind: input, shape index: {}]   ;;  %s3954_s2 = inlined_call_operand.vmem [shape: f32[17,32], index: 2, kind: input, shape index: {}]   ;;  %s3955_s3 = inlined_call_operand.vmem [shape: f32[8,128], index: 3, kind: input, shape index: {}]   ;;  %s3956_s4 = inlined_call_operand.vmem [shape: f32[32,64], index: 4, kind: input, shape index: {}]   ;;  %s3957_s5 = inlined_call_operand.vmem [shape: f32[2,32,96], index: 5, kind: input, shape index: {}]   ;;  %s3958_s6 = inlined_call_operand.vmem [shape: f32[2,32,32], index: 6, kind: input, shape index: {}]   ;;  %s3959_s7 = inlined_call_operand.vmem [shape: f32[2,32,128], index: 7, kind: input, shape index: {}]   ;;  %s3960_s8 = inlined_call_operand.vmem [shape: f32[2,128,32], index: 8, kind: input, shape index: {}]   ;;  %s3961_s9 = inlined_call_operand.vmem [shape: f32[2,8,128], index: 9, kind: input, shape index: {}]   ;;  %s3962_s10 = inlined_call_operand.vmem [shape: f32[2,1,64], index: 10, kind: output, shape index: {}]  }
   0x1   :  { %s3330_s15 = smov 0   ;;  %s3332_s16 = smov 0  }
   0x2   :  { %s3334_s17 = smov 0  }
   0x3 LB: > { %3966 = sst [smem:[#allocation3_spill]] %s3245_s15  ;;  %s29_s18 = sadd.s32 1, %s3245_s15  ;;  %s3253_s17 = sphi %s3334_s17, %s20_s17   ;;  %s3249_s16 = sphi %s3332_s16, %s3976_s16   ;;  %s3245_s15 = sphi %s3330_s15, %s3975_s15   ;;  %s3241_s14 = sphi %s3328_s14, %s3974_s14   ;;  %s3237_s13 = sphi %s3326_s13, %s3973_s13  }
   0x4   : > { %3967 = sst [smem:[#allocation4_spill]] %s3249_s16  ;;  %s32_s19 = sadd.s32 1, %s3249_s16 }
   0x5   : > { %3968 = sst [smem:[#allocation5_spill]] %s3253_s17  ;;  %p30_p0 = scmp.ge.s32.totalorder %s29_s18, 2 }
   0x6   : > { %p2605_p1 = scmp.ge.s32.totalorder %s3253_s17, 1  ;;  %p373_p2 = scmp.lt.s32.totalorder %s3253_s17, 5 }
   0x7   : > { %s3978_s18 = smov (%p30_p0, %s29_s18), 0  ;;  %s3980_s19 = smov (!%p30_p0, %s32_s19), %s3249_s16 }
   0x8   : > { %3969 = sst [smem:[#allocation6_spill]] %s3978_s18  ;;  %p374_p3 = pnand %p2605_p1, %p373_p2 }
   0x9   : > { %p34_p4 = scmp.ge.s32.totalorder %s3980_s19, 2  ;;  %p433_p5 = scmp.lt.s32.totalorder (!%p374_p3), %s3241_s14, 1 }
   0xa   : > { %377 = sbr.rel (%p374_p3) target bundleno = 4349 (0x10fd), region = 60  ;;  %p438_p6 = scmp.lt.s32.totalorder (!%p374_p3), %s3237_s13, 1 }
   0xb   : > { %s3982_s19 = smov (%p34_p4, %s3980_s19), 0  ;;  %p2616_p7 = scmp.ne.s32.totalorder (!%p374_p3), %s3237_s13, 0 }
   0xc   : > { %3970 = sst [smem:[#allocation7_spill]] %s3982_s19 }
   0xf   : > { %s3984_s14 = smov (!%p433_p5, %s3241_s14), 1 }
  0x10   : > { %s439_s20 = scalar_select %p438_p6, %s3237_s13, 1 }
  0x11   : > { %s3086_s21 = smul.u32 48, %s3984_s14 }
  0x12   : > { %s2682_s25 = sshll.u32 %s439_s20, 5  ;;  %s2685_s26 = sshll.u32 %s439_s20, 7 }
  0x13   : > { %s3370_s29 = scalar_lea.vmem %s3952_s0, %s3086_s21  ;;  %s3375_s12 = scalar_lea.vmem %s3957_s5, %s2682_s25 }
  0x14   : > { %s3380_s16 = scalar_lea.vmem %s3958_s6, %s2682_s25  ;;  %s3385_s23 = scalar_lea.vmem %s3959_s7, %s2682_s25 }
  0x15   : > { %s3390_s21 = scalar_lea.vmem %s3960_s8, %s2685_s26  ;;  %s2615_s27 = sshll.u32 %s439_s20, 3 }
  0x16   : > { %s3395_s11 = scalar_lea.vmem %s3961_s9, %s2615_s27  ;;  %468 = sbr.rel (%p2616_p7) target bundleno = 276 (0x114), region = 64 }
  0x1b   : > { %v490_v0 = vld [vmem:[%s3953_s1 + $0x78] sm:$0xff]  ;;  %v3255_v1 = vmov 0.0   ;;  %v489_v2 = vld [vmem:[%s3953_s1 + $0x70] sm:$0xff]  ;;  %v488_v3 = vld [vmem:[%s3953_s1 + $0x68] sm:$0xff]  ;;  %vm502_vm0 = vcmask 523264   ;;  %vm592_vm1 = vcmask 261120  }
  0x1c   : > { %3038 = vmatprep.subr.mxu1 %v3255_v1  ;;  %512 = vmatprep.subr.mxu0 %v3255_v1  ;;  %v487_v4 = vld [vmem:[%s3953_s1 + $0x60] sm:$0xff]  ;;  %v486_v5 = vld [vmem:[%s3953_s1 + $0x58] sm:$0xff]  ;;  %v485_v6 = vld [vmem:[%s3953_s1 + $0x50] sm:$0xff]  ;;  %vm595_vm2 = vcmask 253952  }
  0x1d   : > { %3062 = vmatpush1.msra.mxu1 %v490_v0  ;;  %513 = vmatpush1.msra.mxu0 %v490_v0  ;;  %v484_v7 = vld [vmem:[%s3953_s1 + $0x48] sm:$0xff]  ;;  %v483_v8 = vld [vmem:[%s3953_s1 + $0x40] sm:$0xff]  ;;  %v482_v9 = vld [vmem:[%s3953_s1 + $0x38] sm:$0xff] }
  0x1e   : > { %3039 = vmatprep.subr.mxu1 %v3255_v1  ;;  %514 = vmatprep.subr.mxu0 %v3255_v1  ;;  %v481_v10 = vld [vmem:[%s3953_s1 + $0x30] sm:$0xff]  ;;  %v480_v11 = vld [vmem:[%s3953_s1 + $0x28] sm:$0xff]  ;;  %v479_v12 = vld [vmem:[%s3953_s1 + $0x20] sm:$0xff] }
  0x1f   : > { %3063 = vmatpush1.msra.mxu1 %v489_v2  ;;  %515 = vmatpush1.msra.mxu0 %v489_v2  ;;  %v478_v13 = vld [vmem:[%s3953_s1 + $0x18] sm:$0xff]  ;;  %v477_v14 = vld [vmem:[%s3953_s1 + $0x10] sm:$0xff]  ;;  %v476_v15 = vld [vmem:[%s3953_s1 + $0x8] sm:$0xff] }
  0x20   : > { %3040 = vmatprep.subr.mxu1 %v3255_v1  ;;  %516 = vmatprep.subr.mxu0 %v3255_v1  ;;  %v475_v16 = vld [vmem:[%s3953_s1] sm:$0xff]  ;;  %v498_v17 = vld [vmem:[%s3953_s1 + $0xb8] sm:$0xff]  ;;  %v497_v18 = vld [vmem:[%s3953_s1 + $0xb0] sm:$0xff] }
  0x21   : > { %3064 = vmatpush1.msra.mxu1 %v488_v3  ;;  %517 = vmatpush1.msra.mxu0 %v488_v3  ;;  %v496_v19 = vld [vmem:[%s3953_s1 + $0xa8] sm:$0xff]  ;;  %v495_v20 = vld [vmem:[%s3953_s1 + $0xa0] sm:$0xff]  ;;  %v494_v21 = vld [vmem:[%s3953_s1 + $0x98] sm:$0xff] }
  0x22   : > { %3041 = vmatprep.subr.mxu1 %v3255_v1  ;;  %518 = vmatprep.subr.mxu0 %v3255_v1  ;;  %v493_v22 = vld [vmem:[%s3953_s1 + $0x90] sm:$0xff]  ;;  %v492_v23 = vld [vmem:[%s3953_s1 + $0x88] sm:$0xff]  ;;  %v472_v24 = vld [vmem:[%s3370_s29 + $0x18] sm:$0xff] }
  0x23   : > { %3065 = vmatpush1.msra.mxu1 %v487_v4  ;;  %519 = vmatpush1.msra.mxu0 %v487_v4  ;;  %v491_v25 = vld [vmem:[%s3953_s1 + $0x80] sm:$0xff]  ;;  %v471_v26 = vld [vmem:[%s3370_s29 + $0x10] sm:$0xff]  ;;  %v470_v27 = vld [vmem:[%s3370_s29 + $0x8] sm:$0xff] }
  0x24   : > { %3042 = vmatprep.subr.mxu1 %v3255_v1  ;;  %520 = vmatprep.subr.mxu0 %v3255_v1  ;;  %v474_v28 = vld [vmem:[%s3370_s29 + $0x28] sm:$0x1]  ;;  %v469_v29 = vld [vmem:[%s3370_s29] sm:$0xff]  ;;  %v501_v37 = vld [vmem:[%s3954_s2 + $0x10] sm:$0x1] }
  0x25   : > { %3066 = vmatpush1.msra.mxu1 %v486_v5  ;;  %521 = vmatpush1.msra.mxu0 %v486_v5  ;;  %v473_v30 = vld [vmem:[%s3370_s29 + $0x20] sm:$0x1]  ;;  %v500_v31 = vld [vmem:[%s3954_s2 + $0x8] sm:$0xff] }
  0x26   : > { %3043 = vmatprep.subr.mxu1 %v3255_v1  ;;  %522 = vmatprep.subr.mxu0 %v3255_v1  ;;  %v499_v33 = vld [vmem:[%s3954_s2] sm:$0xff] }
  0x27   : > { %3067 = vmatpush1.msra.mxu1 %v485_v6  ;;  %523 = vmatpush1.msra.mxu0 %v485_v6 }
  0x28   : > { %3044 = vmatprep.subr.mxu1 %v3255_v1  ;;  %524 = vmatprep.subr.mxu0 %v3255_v1 }
  0x29   : > { %3068 = vmatpush1.msra.mxu1 %v484_v7  ;;  %525 = vmatpush1.msra.mxu0 %v484_v7 }
  0x2a   : > { %3045 = vmatprep.subr.mxu1 %v3255_v1  ;;  %526 = vmatprep.subr.mxu0 %v3255_v1 }
  0x2b   : > { %3069 = vmatpush1.msra.mxu1 %v483_v8  ;;  %527 = vmatpush1.msra.mxu0 %v483_v8 }
  0x2c   : > { %3046 = vmatprep.subr.mxu1 %v3255_v1  ;;  %528 = vmatprep.subr.mxu0 %v3255_v1 }
  0x2d   : > { %3070 = vmatpush1.msra.mxu1 %v482_v9  ;;  %529 = vmatpush1.msra.mxu0 %v482_v9 }
  0x2e   : > { %3047 = vmatprep.subr.mxu1 %v3255_v1  ;;  %530 = vmatprep.subr.mxu0 %v3255_v1 }
  0x2f   : > { %3071 = vmatpush1.msra.mxu1 %v481_v10  ;;  %531 = vmatpush1.msra.mxu0 %v481_v10 }
  0x30   : > { %3048 = vmatprep.subr.mxu1 %v3255_v1  ;;  %532 = vmatprep.subr.mxu0 %v3255_v1 }
  0x31   : > { %3072 = vmatpush1.msra.mxu1 %v480_v11  ;;  %533 = vmatpush1.msra.mxu0 %v480_v11 }
  0x32   : > { %3049 = vmatprep.subr.mxu1 %v3255_v1  ;;  %534 = vmatprep.subr.mxu0 %v3255_v1 }
  0x33   : > { %3073 = vmatpush1.msra.mxu1 %v479_v12  ;;  %535 = vmatpush1.msra.mxu0 %v479_v12 }
  0x34   : > { %3050 = vmatprep.subr.mxu1 %v3255_v1  ;;  %536 = vmatprep.subr.mxu0 %v3255_v1 }
  0x35   : > { %3074 = vmatpush1.msra.mxu1 %v478_v13  ;;  %537 = vmatpush1.msra.mxu0 %v478_v13 }
  0x36   : > { %3051 = vmatprep.subr.mxu1 %v3255_v1  ;;  %538 = vmatprep.subr.mxu0 %v3255_v1 }
  0x37   : > { %3075 = vmatpush1.msra.mxu1 %v477_v14  ;;  %539 = vmatpush1.msra.mxu0 %v477_v14 }
  0x38   : > { %3052 = vmatprep.subr.mxu1 %v3255_v1  ;;  %540 = vmatprep.subr.mxu0 %v3255_v1 }
  0x39   : > { %3076 = vmatpush1.msra.mxu1 %v476_v15  ;;  %541 = vmatpush1.msra.mxu0 %v476_v15 }
  0x3a   : > { %3053 = vmatprep.subr.mxu1 %v3255_v1  ;;  %542 = vmatprep.subr.mxu0 %v3255_v1 }
  0x3b   : > { %3077 = vmatpush1.msra.mxu1 %v475_v16  ;;  %543 = vmatpush1.msra.mxu0 %v475_v16 }
  0x3c   : > { %3054 = vmatprep.subr.mxu1 %v3255_v1  ;;  %560 = vmatprep.subr.mxu0 %v3255_v1 }
  0x3d   : > { %3078 = vmatpush2.msra.mxu1 %v498_v17  ;;  %561 = vmatpush2.msra.mxu0 %v498_v17 }
  0x3e   : > { %3055 = vmatprep.subr.mxu1 %v3255_v1  ;;  %562 = vmatprep.subr.mxu0 %v3255_v1 }
  0x3f   : > { %3079 = vmatpush2.msra.mxu1 %v497_v18  ;;  %563 = vmatpush2.msra.mxu0 %v497_v18 }
  0x40   : > { %3056 = vmatprep.subr.mxu1 %v3255_v1  ;;  %564 = vmatprep.subr.mxu0 %v3255_v1 }
  0x41   : > { %3080 = vmatpush2.msra.mxu1 %v496_v19  ;;  %565 = vmatpush2.msra.mxu0 %v496_v19 }
  0x42   : > { %3057 = vmatprep.subr.mxu1 %v3255_v1  ;;  %566 = vmatprep.subr.mxu0 %v3255_v1 }
  0x43   : > { %3081 = vmatpush2.msra.mxu1 %v495_v20  ;;  %567 = vmatpush2.msra.mxu0 %v495_v20 }
  0x44   : > { %3058 = vmatprep.subr.mxu1 %v3255_v1  ;;  %568 = vmatprep.subr.mxu0 %v3255_v1 }
  0x45   : > { %3082 = vmatpush2.msra.mxu1 %v494_v21  ;;  %569 = vmatpush2.msra.mxu0 %v494_v21 }
  0x46   : > { %3059 = vmatprep.subr.mxu1 %v3255_v1  ;;  %570 = vmatprep.subr.mxu0 %v3255_v1 }
  0x47   : > { %3083 = vmatpush2.msra.mxu1 %v493_v22  ;;  %571 = vmatpush2.msra.mxu0 %v493_v22 }
  0x48   : > { %3060 = vmatprep.subr.mxu1 %v3255_v1  ;;  %572 = vmatprep.subr.mxu0 %v3255_v1 }
  0x49   : > { %3084 = vmatpush2.msra.mxu1 %v492_v23  ;;  %573 = vmatpush2.msra.mxu0 %v492_v23 }
  0x4a   : > { %3061 = vmatprep.subr.mxu1 %v3255_v1  ;;  %2618 = vmatprep.mubr.msk.f32.mxu1 %vm502_vm0, %v472_v24 }
  0x4b   : > { %3085 = vmatpush2.msra.mxu1 %v491_v25  ;;  %574 = vmatprep.subr.mxu0 %v3255_v1 }
  0x4c   : > { %582 = vmatmul.mubr.f32.vlgmr.msra.gmra.mxu1 %v471_v26  ;;  %575 = vmatpush2.msra.mxu0 %v491_v25 }
  0x4d   : > { %2617 = vmatprep.mubr.msk.f32.mxu0 %vm502_vm0, %v470_v27  ;;  %2619 = vmatprep.mubr.msk.f32.mxu1 %vm502_vm0, %v474_v28 }
  0x4e   : > { %577 = vmatmul.mubr.f32.vlgmr.msra.gmra.mxu0 %v469_v29 }
  0x50   : > { %587 = vmatmul.mubr.f32.gmra.mxu1 %v473_v30 }
 0x10c   : > { %v583_v32 = vpop.f32.mrf.mxu1 }
 0x10d   : > { %v584_v34 = vadd.f32 %v583_v32, %v500_v31 }
 0x10e   : > { %v578_v35 = vpop.f32.mrf.mxu0  ;;  %v585_v36 = vpop.f32.mrf.mxu1 }
 0x10f   : > { %594 = vst.msk [vmem:[#allocation2 + $0x8] sm:$0xff] %vm592_vm1, %v584_v34  ;;  %v579_v38 = vadd.f32 %v578_v35, %v499_v33 }
 0x110   : > { %v580_v39 = vpop.f32.mrf.mxu0  ;;  %v588_v40 = vpop.f32.mrf.mxu1 }
 0x111   : > { %593 = vst.msk [vmem:[#allocation2] sm:$0xff] %vm592_vm1, %v579_v38  ;;  %v589_v41 = vadd.f32 %v588_v40, %v501_v37 }
 0x112   : > { %v590_v42 = vpop.f32.mrf.mxu1 }
 0x113   : > { %596 = vst.msk [vmem:[#allocation2 + $0x10] sm:$0x1] %vm595_vm2, %v589_v41 }
 0x114 PF: > { %vm601_vm3 = vcmask 261120   ;;  %vm608_vm4 = vcmask 253952   ;;  %v660_v0 = vld [vmem:[%s3375_s12 + $0x18] sm:$0xff]  ;;  %v3256_v1 = vmov 0.0   ;;  %v659_v2 = vld [vmem:[%s3375_s12 + $0x10] sm:$0xff]  ;;  %vm3257_vm5 = vmmov 0  }
 0x115   : > { %2788 = vmatprep.subr.mxu1 %v3256_v1  ;;  %2796 = vmatprep.mubr.msk.f32.mxu1 %vm3257_vm5, %v3256_v1  ;;  %v658_v3 = vld [vmem:[%s3375_s12 + $0x8] sm:$0xff]  ;;  %v657_v4 = vld [vmem:[%s3375_s12] sm:$0xff]  ;;  %v643_v12 = vlaneseq  ;;  %s3258_s29 = smov 96   ;;  %s3259_s12 = smov 88   ;;  %vm767_vm6 = vcmask 64512   ;;  %vm863_vm7 = vcmask 138240  }
 0x116   : > { %v598_v45 = vld [vmem:[#allocation2 + $0x8] sm:$0xff]  ;;  %2789 = vmatpush3.msra.mxu1 %v660_v0  ;;  %2820 = vmatprep.subr.mxu0 %v3256_v1  ;;  %v3560_v17 = vld [vmem:[%s3395_s11] sm:$0xff]  ;;  %s3260_s25 = smov 120   ;;  %vm870_vm8 = vcmask 131072   ;;  %s3261_s26 = smov 64   ;;  %vm915_vm9 = vcmask 1040384  }
 0x117   : > { %v605_v48 = vsel %vm601_vm3, %v598_v45, 0.0  ;;  %2790 = vmatprep.subr.mxu1 %v3256_v1  ;;  %2826 = vmatprep.mubr.msk.f32.mxu0 %vm3257_vm5, %v3256_v1  ;;  %v3556_v15 = vshrl.u32 %v643_v12, 7  ;;  %s3262_s22 = smov 56   ;;  %s3263_s27 = smov 80  }
 0x118   : > { %v597_v43 = vld [vmem:[#allocation2] sm:$0xff]  ;;  %2791 = vmatpush3.msra.mxu1 %v659_v2  ;;  %s3264_s28 = smov 112   ;;  %s3265_s30 = smov 48  }
 0x119   : > { %v602_v46 = vsel %vm601_vm3, %v597_v43, 0.0  ;;  %2792 = vmatprep.subr.mxu1 %v3256_v1  ;;  %v645_v16 = vsub.s32 0, %v3556_v15  ;;  %v652_v18 = vsub.s32 1, %v3556_v15  ;;  %v663_v33 = vsub.s32 4, %v3556_v15  ;;  %s3266_s18 = smov 72   ;;  %s3267_s19 = smov 104  }
 0x11a   : > { %v599_v44 = vld [vmem:[#allocation2 + $0x10] sm:$0x1]  ;;  %603 = vadd.xlane.f32.xlu0 %v602_v46  ;;  %2793 = vmatpush3.msra.mxu1 %v658_v3  ;;  %s3268_s15 = smov 40   ;;  %p2678_p8 = scmp.ne.s32.totalorder %s3237_s13, 1 }
 0x11b   : > { %v609_v47 = vsel %vm608_vm4, %v599_v44, 0.0  ;;  %2794 = vmatprep.subr.mxu1 %v3256_v1  ;;  %v646_v19 = vrot.slane %v3560_v17, %v645_v16  ;;  %v653_v22 = vrot.slane %v3560_v17, %v652_v18  ;;  %v664_v36 = vrot.slane %v3560_v17, %v663_v33 }
 0x11c   : > { %610 = vadd.xlane.f32.xlu1 %v609_v47  ;;  %2795 = vmatpush3.msra.mxu1 %v657_v4 }
 0x11d   : > { %2805 = vmatprep.subr.mxu1 %v3256_v1 }
 0x11e   : > { %606 = vadd.xlane.f32.xlu0 %v605_v48 }
 0x1a3   : > { %v604_v49 = vpop.xlane.xlu0 %603 }
 0x1a4   : > { %v613_v51 = vmul.f32 0.03125, %v604_v49 }
 0x1a5   : > { %v611_v50 = vpop.xlane.xlu1 %610 }
 0x1a6   : > { %v615_v52 = vmul.f32 0.03125, %v611_v50  ;;  %v616_v53 = vsub.f32 %v597_v43, %v613_v51 }
 0x1a7   : > { %v607_v55 = vpop.xlane.xlu0 %606 }
 0x1a8   : > { %v618_v54 = vsub.f32 %v599_v44, %v615_v52  ;;  %v614_v56 = vmul.f32 0.03125, %v607_v55  ;;  %v619_v57 = vmul.f32 %v616_v53, %v616_v53 }
 0x1aa   : > { %v621_v58 = vmul.f32 %v618_v54, %v618_v54  ;;  %v617_v59 = vsub.f32 %v598_v45, %v614_v56  ;;  %v622_v60 = vsel %vm601_vm3, %v619_v57, 0.0 }
 0x1ab   : > { %623 = vadd.xlane.f32.xlu1 %v622_v60 }
 0x1ac   : > { %v628_v61 = vsel %vm608_vm4, %v621_v58, 0.0  ;;  %v620_v62 = vmul.f32 %v617_v59, %v617_v59 }
 0x1ae   : > { %v625_v63 = vsel %vm601_vm3, %v620_v62, 0.0 }
 0x1af   : > { %629 = vadd.xlane.f32.xlu1 %v628_v61  ;;  %626 = vadd.xlane.f32.xlu0 %v625_v63 }
 0x234   : > { %v624_v5 = vpop.xlane.xlu1 %623 }
 0x235   : > { %v631_v6 = vmul.f32 0.03125, %v624_v5 }
 0x237   : > { %v634_v7 = vadd.f32 1e-06, %v631_v6 }
 0x238   : > { %v630_v8 = vpop.xlane.xlu1 %629  ;;  %v627_v9 = vpop.xlane.xlu0 %626 }
 0x239   : > { %3143 = vrsqrt.f32 %v634_v7  ;;  %v633_v10 = vmul.f32 0.03125, %v630_v8  ;;  %v632_v11 = vmul.f32 0.03125, %v627_v9 }
 0x23b   : > { %v636_v13 = vadd.f32 1e-06, %v633_v10  ;;  %v635_v14 = vadd.f32 1e-06, %v632_v11 }
 0x23d   : > { %3145 = vrsqrt.f32 %v636_v13 }
 0x23e   : > { %3147 = vrsqrt.f32 %v635_v14 }
 0x246   : > { %v3144_v20 = vpop.eup %3143 }
 0x247   : > { %v640_v21 = vmul.f32 %v3144_v20, %v616_v53 }
 0x249   : > { %v647_v23 = vmul.f32 %v646_v19, %v640_v21 }
 0x24a   : > { %v3146_v24 = vpop.eup %3145 }
 0x24b   : > { %v3148_v25 = vpop.eup %3147  ;;  %v654_v26 = vadd.f32 %v653_v22, %v647_v23  ;;  %v642_v28 = vmul.f32 %v3146_v24, %v618_v54 }
 0x24c   : > { %v641_v27 = vmul.f32 %v3148_v25, %v617_v59 }
 0x24d   : > { %2797 = vmatmul.mubr.msk.f32.vlgmr.msra.gmra.mxu1 %vm601_vm3, %v654_v26  ;;  %v649_v31 = vmul.f32 %v646_v19, %v642_v28 }
 0x24e   : > { %2799 = vmatprep.mubr.msk.f32.mxu1 %vm3257_vm5, %v3256_v1  ;;  %v648_v29 = vmul.f32 %v646_v19, %v641_v27 }
 0x24f   : > { %v656_v32 = vadd.f32 %v653_v22, %v649_v31 }
 0x250   : > { %v655_v30 = vadd.f32 %v653_v22, %v648_v29 }
 0x252   : > { %2800 = vmatmul.mubr.msk.f32.gmra.mxu1 %vm601_vm3, %v655_v30 }
 0x253   : > { %2802 = vmatprep.mubr.msk.f32.mxu1 %vm3257_vm5, %v3256_v1 }
 0x256   : > { %2803 = vmatmul.mubr.msk.f32.gmra.mxu1 %vm601_vm3, %v656_v32 }
 0x257   : > { %2811 = vmatprep.mubr.msk.f32.mxu1 %vm3257_vm5, %v3256_v1 }
 0x30d   : > { %v740_v34 = vpop.f32.mrf.mxu1 }
 0x30e   : > { %v3583_v41 = vadd.f32 %v740_v34, %v664_v36 }
 0x30f   : > { %v2798_v35 = vpop.f32.mrf.mxu1 }
 0x312   : > { %v745_v37 = vpop.f32.mrf.mxu1 }
 0x313   : > { %v3580_v38 = vadd.f32 %v745_v37, %v664_v36 }
 0x314   : > { %v2801_v39 = vpop.f32.mrf.mxu1 }
 0x315   : > { %763 = vrot.lane.b32.xlu1 %v3580_v38, %s3258_s29 }
 0x316   : > { %v750_v40 = vpop.f32.mrf.mxu1 }
 0x317   : > { %v3585_v42 = vadd.f32 %v750_v40, %v664_v36 }
 0x318   : > { %v2804_v43 = vpop.f32.mrf.mxu1 }
 0x319   : > { %761 = vrot.lane.b32.xlu1 %v3583_v41, %s3258_s29  ;;  %765 = vrot.lane.b32.xlu0 %v3585_v42, %s3258_s29 }
 0x31d   : > { %1008 = vrot.lane.b32.xlu1 %v3585_v42, %s3259_s12  ;;  %1006 = vrot.lane.b32.xlu0 %v3580_v38, %s3259_s12 }
 0x321   : > { %1004 = vrot.lane.b32.xlu1 %v3583_v41, %s3259_s12  ;;  %998 = vrot.lane.b32.xlu0 %v3583_v41, %s3260_s25 }
 0x325   : > { %1000 = vrot.lane.b32.xlu1 %v3580_v38, %s3260_s25  ;;  %1002 = vrot.lane.b32.xlu0 %v3585_v42, %s3260_s25 }
 0x387   : > { %v764_v44 = vpop.permute.xlu1 %763 }
 0x38b   : > { %v766_v45 = vpop.permute.xlu0 %765  ;;  %v762_v46 = vpop.permute.xlu1 %761 }
 0x38c   : > { %2806 = vmatpush3.xpose.msk.msra.mxu1 %vm767_vm6, %v766_v45 }
 0x38d   : > { %2807 = vmatprep.subr.mxu1 %v3256_v1 }
 0x38f   : > { %v1009_v47 = vpop.permute.xlu1 %1008  ;;  %v1007_v48 = vpop.permute.xlu0 %1006 }
 0x390   : > { %2808 = vmatpush3.xpose.msk.msra.mxu1 %vm767_vm6, %v764_v44 }
 0x391   : > { %2809 = vmatprep.subr.mxu1 %v3256_v1 }
 0x393   : > { %v1005_v49 = vpop.permute.xlu1 %1004  ;;  %v999_v50 = vpop.permute.xlu0 %998 }
 0x394   : > { %2810 = vmatpush3.xpose.msk.msra.mxu1 %vm767_vm6, %v762_v46 }
 0x395   : > { %2835 = vmatprep.subr.mxu1 %v3256_v1 }
 0x397   : > { %2812 = vmatmul.mubr.msk.f32.vlgmr.msra.gmra.mxu1 %vm767_vm6, %v3583_v41  ;;  %v1001_v51 = vpop.permute.xlu1 %1000  ;;  %v1003_v52 = vpop.permute.xlu0 %1002 }
 0x398   : > { %2836 = vmatpush3.xpose.msk.msra.mxu1 %vm767_vm6, %v1009_v47  ;;  %2814 = vmatprep.mubr.msk.f32.mxu1 %vm3257_vm5, %v3256_v1 }
 0x399   : > { %2837 = vmatprep.subr.mxu1 %v3256_v1 }
 0x39b   : > { %2815 = vmatmul.mubr.msk.f32.gmra.mxu1 %vm767_vm6, %v3580_v38 }
 0x39c   : > { %2838 = vmatpush3.xpose.msk.msra.mxu1 %vm767_vm6, %v1007_v48  ;;  %2817 = vmatprep.mubr.msk.f32.mxu1 %vm3257_vm5, %v3256_v1 }
 0x39d   : > { %2839 = vmatprep.subr.mxu1 %v3256_v1 }
 0x39f   : > { %2818 = vmatmul.mubr.msk.f32.gmra.mxu1 %vm767_vm6, %v3585_v42 }
 0x3a0   : > { %2840 = vmatpush3.xpose.msk.msra.mxu1 %vm767_vm6, %v1005_v49  ;;  %2841 = vmatprep.mubr.msk.f32.mxu1 %vm3257_vm5, %v3256_v1 }
 0x3a1   : > { %2865 = vmatprep.subr.mxu1 %v3256_v1 }
 0x3a3   : > { %2842 = vmatmul.mubr.msk.f32.vlgmr.msra.gmra.mxu1 %vm767_vm6, %v999_v50 }
 0x3a4   : > { %2844 = vmatprep.mubr.msk.f32.mxu1 %vm3257_vm5, %v3256_v1 }
 0x3a7   : > { %2845 = vmatmul.mubr.msk.f32.gmra.mxu1 %vm767_vm6, %v1001_v51 }
 0x3a8   : > { %2847 = vmatprep.mubr.msk.f32.mxu1 %vm3257_vm5, %v3256_v1 }
 0x3ab   : > { %2848 = vmatmul.mubr.msk.f32.gmra.mxu1 %vm767_vm6, %v1003_v52 }
 0x3ac   : > { %2867 = vmatprep.mubr.msk.f32.mxu1 %vm3257_vm5, %v3256_v1 }
 0x457   : > { %v846_v53 = vpop.f32.mrf.mxu1 }
 0x458   : > { %v860_v54 = vmul.f32 0.35355338, %v846_v53 }
 0x459   : > { %v2813_v55 = vpop.f32.mrf.mxu1 }
 0x45a   : > { %v864_v56 = vsel %vm863_vm7, %v860_v54, -inf }
 0x45b   : > { %865 = vmax.xlane.f32.xlu1 %v864_v56  ;;  %v851_v57 = vpop.f32.mrf.mxu1 }
 0x45c   : > { %v861_v58 = vmul.f32 0.35355338, %v851_v57 }
 0x45d   : > { %v2816_v59 = vpop.f32.mrf.mxu1 }
 0x45e   : > { %v867_v60 = vsel %vm863_vm7, %v861_v58, -inf }
 0x45f   : > { %868 = vmax.xlane.f32.xlu0 %v867_v60  ;;  %v856_v61 = vpop.f32.mrf.mxu1 }
 0x460   : > { %v862_v62 = vmul.f32 0.35355338, %v856_v61 }
 0x461   : > { %v2819_v63 = vpop.f32.mrf.mxu1 }
 0x462   : > { %v871_v0 = vsel %vm870_vm8, %v862_v62, -inf }
 0x463   : > { %872 = vmax.xlane.f32.xlu0 %v871_v0  ;;  %v1088_v2 = vpop.f32.mrf.mxu1 }
 0x464   : > { %v1102_v3 = vmul.f32 0.35355338, %v1088_v2 }
 0x465   : > { %v2843_v4 = vpop.f32.mrf.mxu1 }
 0x466   : > { %v1105_v5 = vsel %vm863_vm7, %v1102_v3, -inf }
 0x467   : > { %1106 = vmax.xlane.f32.xlu0 %v1105_v5  ;;  %v1093_v6 = vpop.f32.mrf.mxu1 }
 0x468   : > { %v1103_v7 = vmul.f32 0.35355338, %v1093_v6 }
 0x469   : > { %v2846_v8 = vpop.f32.mrf.mxu1 }
 0x46a   : > { %v1108_v9 = vsel %vm863_vm7, %v1103_v7, -inf }
 0x46b   : > { %1109 = vmax.xlane.f32.xlu1 %v1108_v9  ;;  %v1098_v10 = vpop.f32.mrf.mxu1 }
 0x46c   : > { %v1104_v11 = vmul.f32 0.35355338, %v1098_v10 }
 0x46d   : > { %v2849_v12 = vpop.f32.mrf.mxu1 }
 0x46e   : > { %v1111_v13 = vsel %vm870_vm8, %v1104_v11, -inf  ;;  %v754_v12 = vld [vmem:[%s3380_s16] sm:$0xff] }
 0x46f   : > { %1112 = vmax.xlane.f32.xlu0 %v1111_v13  ;;  %v755_v13 = vld [vmem:[%s3380_s16 + $0x8] sm:$0xff] }
 0x470   : > { %2866 = vmatpush3.msra.mxu1 %v755_v13 }
 0x471   : > { %2887 = vmatprep.subr.mxu1 %v3256_v1 }
 0x47c   : > { %902 = vrot.lane.b32.xlu1 %v3585_v42, %s3261_s26 }
 0x480   : > { %898 = vrot.lane.b32.xlu1 %v3583_v41, %s3261_s26 }
 0x484   : > { %1142 = vrot.lane.b32.xlu1 %v3585_v42, %s3262_s22 }
 0x485   : > { %900 = vrot.lane.b32.xlu0 %v3580_v38, %s3261_s26 }
 0x4e4   : > { %v866_v14 = vpop.xlane.xlu1 %865 }
 0x4e5   : > { %v874_v19 = vsub.f32 %v860_v54, %v866_v14 }
 0x4e7   : > { %v877_v20 = vmul.f32 1.442695, %v874_v19 }
 0x4e8   : > { %v869_v21 = vpop.xlane.xlu0 %868 }
 0x4e9   : > { %3149 = vpow2.f32 %v877_v20  ;;  %v875_v22 = vsub.f32 %v861_v58, %v869_v21 }
 0x4eb   : > { %v879_v23 = vmul.f32 1.442695, %v875_v22 }
 0x4ec   : > { %v873_v24 = vpop.xlane.xlu0 %872 }
 0x4ed   : > { %3151 = vpow2.f32 %v879_v23  ;;  %v876_v25 = vsub.f32 %v862_v62, %v873_v24 }
 0x4ef   : > { %v881_v26 = vmul.f32 1.442695, %v876_v25 }
 0x4f0   : > { %v1107_v27 = vpop.xlane.xlu0 %1106 }
 0x4f1   : > { %3153 = vpow2.f32 %v881_v26  ;;  %v1114_v28 = vsub.f32 %v1102_v3, %v1107_v27 }
 0x4f3   : > { %v1117_v29 = vmul.f32 1.442695, %v1114_v28 }
 0x4f4   : > { %v1110_v30 = vpop.xlane.xlu1 %1109 }
 0x4f5   : > { %3155 = vpow2.f32 %v1117_v29  ;;  %v1115_v31 = vsub.f32 %v1103_v7, %v1110_v30 }
 0x4f6   : > { %v3150_v32 = vpop.eup %3149 }
 0x4f7   : > { %v1119_v33 = vmul.f32 1.442695, %v1115_v31  ;;  %v883_v34 = vsel %vm863_vm7, %v3150_v32, 0.0 }
 0x4f8   : > { %884 = vadd.xlane.f32.xlu1 %v883_v34  ;;  %v903_v35 = vpop.permute.xlu1 %902  ;;  %v1113_v36 = vpop.xlane.xlu0 %1112 }
 0x4f9   : > { %3157 = vpow2.f32 %v1119_v33  ;;  %v1116_v37 = vsub.f32 %v1104_v11, %v1113_v36  ;;  %2821 = vmatpush3.msk.msra.mxu0 %vm915_vm9, %v903_v35 }
 0x4fa   : > { %v3152_v39 = vpop.eup %3151  ;;  %2822 = vmatprep.subr.mxu0 %v3256_v1 }
 0x4fb   : > { %v1121_v40 = vmul.f32 1.442695, %v1116_v37  ;;  %v886_v43 = vsel %vm863_vm7, %v3152_v39, 0.0 }
 0x4fc   : > { %887 = vadd.xlane.f32.xlu0 %v886_v43  ;;  %v901_v44 = vpop.permute.xlu0 %900  ;;  %v899_v46 = vpop.permute.xlu1 %898 }
 0x4fd   : > { %3159 = vpow2.f32 %v1121_v40  ;;  %2823 = vmatpush3.msra.mxu0 %v901_v44 }
 0x4fe   : > { %v3154_v45 = vpop.eup %3153  ;;  %2824 = vmatprep.subr.mxu0 %v3256_v1 }
 0x4ff   : > { %2825 = vmatpush3.msra.mxu0 %v899_v46  ;;  %v889_v47 = vsel %vm870_vm8, %v3154_v45, 0.0 }
 0x500   : > { %890 = vadd.xlane.f32.xlu1 %v889_v47  ;;  %2850 = vmatprep.subr.mxu0 %v3256_v1  ;;  %v1143_v54 = vpop.permute.xlu1 %1142 }
 0x502   : > { %v3156_v48 = vpop.eup %3155 }
 0x503   : > { %v1123_v49 = vsel %vm863_vm7, %v3156_v48, 0.0 }
 0x504   : > { %1124 = vadd.xlane.f32.xlu0 %v1123_v49 }
 0x506   : > { %v3158_v50 = vpop.eup %3157 }
 0x507   : > { %v1126_v51 = vsel %vm863_vm7, %v3158_v50, 0.0 }
 0x508   : > { %1127 = vadd.xlane.f32.xlu1 %v1126_v51 }
 0x50a   : > { %v3160_v52 = vpop.eup %3159 }
 0x50b   : > { %v1129_v53 = vsel %vm870_vm8, %v3160_v52, 0.0 }
 0x50c   : > { %1130 = vadd.xlane.f32.xlu0 %v1129_v53 }
 0x519   : > { %1140 = vrot.lane.b32.xlu1 %v3580_v38, %s3262_s22 }
 0x51d   : > { %1425 = vrot.lane.b32.xlu1 %v3585_v42, %s3263_s27 }
 0x521   : > { %1421 = vrot.lane.b32.xlu1 %v3583_v41, %s3263_s27 }
 0x522   : > { %1138 = vrot.lane.b32.xlu0 %v3583_v41, %s3262_s22  ;;  %s3971_s22 = scalar_lea.vmem (!%p2678_p8), %s3962_s10, %s3984_s14 }
 0x525   : > { %1417 = vrot.lane.b32.xlu1 %v3580_v38, %s3264_s28 }
 0x526   : > { %1423 = vrot.lane.b32.xlu0 %v3580_v38, %s3263_s27 }
 0x52a   : > { %1415 = vrot.lane.b32.xlu0 %v3583_v41, %s3264_s28 }
 0x52e   : > { %1419 = vrot.lane.b32.xlu0 %v3585_v42, %s3264_s28 }
 0x581   : > { %v885_v55 = vpop.xlane.xlu1 %884 }
 0x582   : > { %3161 = vrcp.f32 %v885_v55 }
 0x585   : > { %v888_v56 = vpop.xlane.xlu0 %887 }
 0x586   : > { %3163 = vrcp.f32 %v888_v56 }
 0x589   : > { %v891_v57 = vpop.xlane.xlu1 %890 }
 0x58a   : > { %3165 = vrcp.f32 %v891_v57 }
 0x58d   : > { %v1125_v58 = vpop.xlane.xlu0 %1124 }
 0x58e   : > { %3167 = vrcp.f32 %v1125_v58 }
 0x58f   : > { %v3162_v59 = vpop.eup %3161 }
 0x590   : > { %v895_v60 = vmul.f32 %v3162_v59, %v3150_v32 }
 0x591   : > { %v1128_v61 = vpop.xlane.xlu1 %1127 }
 0x592   : > { %3169 = vrcp.f32 %v1128_v61  ;;  %2827 = vmatmul.mubr.msk.f32.vlgmr.msra.gmra.mxu0 %vm863_vm7, %v895_v60 }
 0x593   : > { %v3164_v62 = vpop.eup %3163  ;;  %2851 = vmatpush3.msk.msra.mxu0 %vm915_vm9, %v1143_v54  ;;  %2829 = vmatprep.mubr.msk.f32.mxu0 %vm3257_vm5, %v3256_v1 }
 0x594   : > { %2852 = vmatprep.subr.mxu0 %v3256_v1  ;;  %v896_v63 = vmul.f32 %v3164_v62, %v3152_v39 }
 0x595   : > { %v1141_v0 = vpop.permute.xlu1 %1140  ;;  %v1131_v2 = vpop.xlane.xlu0 %1130 }
 0x596   : > { %3171 = vrcp.f32 %v1131_v2  ;;  %2830 = vmatmul.mubr.msk.f32.gmra.mxu0 %vm863_vm7, %v896_v63 }
 0x597   : > { %v3166_v3 = vpop.eup %3165  ;;  %2853 = vmatpush3.msra.mxu0 %v1141_v0  ;;  %2832 = vmatprep.mubr.msk.f32.mxu0 %vm3257_vm5, %v3256_v1 }
 0x598   : > { %2854 = vmatprep.subr.mxu0 %v3256_v1  ;;  %v897_v4 = vmul.f32 %v3166_v3, %v3154_v45 }
 0x599   : > { %v1139_v5 = vpop.permute.xlu0 %1138  ;;  %v1426_v25 = vpop.permute.xlu1 %1425 }
 0x59a   : > { %2833 = vmatmul.mubr.msk.f32.gmra.mxu0 %vm863_vm7, %v897_v4 }
 0x59b   : > { %v3168_v6 = vpop.eup %3167  ;;  %2855 = vmatpush3.msra.mxu0 %v1139_v5  ;;  %2856 = vmatprep.mubr.msk.f32.mxu0 %vm3257_vm5, %v3256_v1 }
 0x59c   : > { %v1135_v7 = vmul.f32 %v3168_v6, %v3156_v48  ;;  %2876 = vmatprep.subr.mxu0 %v3256_v1 }
 0x59d   : > { %v1424_v28 = vpop.permute.xlu0 %1423  ;;  %v1422_v31 = vpop.permute.xlu1 %1421 }
 0x59e   : > { %2857 = vmatmul.mubr.msk.f32.vlgmr.msra.gmra.mxu0 %vm863_vm7, %v1135_v7 }
 0x59f   : > { %v3170_v8 = vpop.eup %3169  ;;  %2859 = vmatprep.mubr.msk.f32.mxu0 %vm3257_vm5, %v3256_v1  ;;  %2877 = vmatpush3.msra.mxu0 %v754_v12 }
 0x5a0   : > { %v1136_v9 = vmul.f32 %v3170_v8, %v3158_v50  ;;  %2902 = vmatprep.subr.mxu0 %v3256_v1 }
 0x5a1   : > { %v1416_v33 = vpop.permute.xlu0 %1415  ;;  %v1418_v34 = vpop.permute.xlu1 %1417 }
 0x5a2   : > { %2860 = vmatmul.mubr.msk.f32.gmra.mxu0 %vm863_vm7, %v1136_v9 }
 0x5a3   : > { %v3172_v10 = vpop.eup %3171  ;;  %2862 = vmatprep.mubr.msk.f32.mxu0 %vm3257_vm5, %v3256_v1 }
 0x5a4   : > { %v1137_v11 = vmul.f32 %v3172_v10, %v3160_v52 }
 0x5a5   : > { %v1420_v35 = vpop.permute.xlu0 %1419 }
 0x5a6   : > { %2863 = vmatmul.mubr.msk.f32.gmra.mxu0 %vm863_vm7, %v1137_v11 }
 0x5a7   : > { %2878 = vmatprep.mubr.msk.f32.mxu0 %vm3257_vm5, %v3256_v1 }
 0x652   : > { %v984_v14 = vpop.f32.mrf.mxu0 }
 0x653   : > { %2879 = vmatmul.mubr.msk.f32.vlgmr.msra.gmra.mxu0 %vm767_vm6, %v984_v14 }
 0x654   : > { %v2828_v19 = vpop.f32.mrf.mxu0  ;;  %2881 = vmatprep.mubr.msk.f32.mxu0 %vm3257_vm5, %v3256_v1 }
 0x656   : > { %v989_v20 = vpop.f32.mrf.mxu0 }
 0x657   : > { %2882 = vmatmul.mubr.msk.f32.gmra.mxu0 %vm767_vm6, %v989_v20 }
 0x658   : > { %v2831_v21 = vpop.f32.mrf.mxu0  ;;  %2884 = vmatprep.mubr.msk.f32.mxu0 %vm3257_vm5, %v3256_v1 }
 0x65a   : > { %v994_v22 = vpop.f32.mrf.mxu0 }
 0x65b   : > { %2885 = vmatmul.mubr.msk.f32.gmra.mxu0 %vm767_vm6, %v994_v22 }
 0x65c   : > { %v2834_v23 = vpop.f32.mrf.mxu0  ;;  %2908 = vmatprep.mubr.msk.f32.mxu0 %vm3257_vm5, %v3256_v1 }
 0x65e   : > { %v1223_v24 = vpop.f32.mrf.mxu0 }
 0x65f   : > { %2868 = vmatmul.mubr.msk.f32.vlgmr.msra.gmra.mxu1 %vm767_vm6, %v1223_v24 }
 0x660   : > { %2888 = vmatpush3.xpose.msk.msra.mxu1 %vm767_vm6, %v1426_v25  ;;  %v2858_v26 = vpop.f32.mrf.mxu0  ;;  %2870 = vmatprep.mubr.msk.f32.mxu1 %vm3257_vm5, %v3256_v1 }
 0x661   : > { %2889 = vmatprep.subr.mxu1 %v3256_v1 }
 0x662   : > { %v1228_v27 = vpop.f32.mrf.mxu0 }
 0x663   : > { %2871 = vmatmul.mubr.msk.f32.gmra.mxu1 %vm767_vm6, %v1228_v27 }
 0x664   : > { %2890 = vmatpush3.xpose.msk.msra.mxu1 %vm767_vm6, %v1424_v28  ;;  %v2861_v29 = vpop.f32.mrf.mxu0  ;;  %2873 = vmatprep.mubr.msk.f32.mxu1 %vm3257_vm5, %v3256_v1 }
 0x665   : > { %2891 = vmatprep.subr.mxu1 %v3256_v1 }
 0x666   : > { %v1233_v30 = vpop.f32.mrf.mxu0 }
 0x667   : > { %2874 = vmatmul.mubr.msk.f32.gmra.mxu1 %vm767_vm6, %v1233_v30 }
 0x668   : > { %2892 = vmatpush3.xpose.msk.msra.mxu1 %vm767_vm6, %v1422_v31  ;;  %v2864_v32 = vpop.f32.mrf.mxu0  ;;  %2893 = vmatprep.mubr.msk.f32.mxu1 %vm3257_vm5, %v3256_v1 }
 0x669   : > { %2917 = vmatprep.subr.mxu1 %v3256_v1 }
 0x66b   : > { %2894 = vmatmul.mubr.msk.f32.vlgmr.msra.gmra.mxu1 %vm767_vm6, %v1416_v33 }
 0x66c   : > { %2896 = vmatprep.mubr.msk.f32.mxu1 %vm3257_vm5, %v3256_v1 }
 0x66f   : > { %2897 = vmatmul.mubr.msk.f32.gmra.mxu1 %vm767_vm6, %v1418_v34 }
 0x670   : > { %2899 = vmatprep.mubr.msk.f32.mxu1 %vm3257_vm5, %v3256_v1 }
 0x673   : > { %2900 = vmatmul.mubr.msk.f32.gmra.mxu1 %vm767_vm6, %v1420_v35 }
 0x674   : > { %2919 = vmatprep.mubr.msk.f32.mxu1 %vm3257_vm5, %v3256_v1 }
 0x713   : > { %v1401_v36 = vpop.f32.mrf.mxu0 }
 0x715   : > { %v2880_v37 = vpop.f32.mrf.mxu0 }
 0x717   : > { %v1406_v39 = vpop.f32.mrf.mxu0 }
 0x719   : > { %v2883_v40 = vpop.f32.mrf.mxu0 }
 0x71b   : > { %v1411_v43 = vpop.f32.mrf.mxu0 }
 0x71d   : > { %v2886_v44 = vpop.f32.mrf.mxu0 }
 0x71f   : > { %v1312_v45 = vpop.f32.mrf.mxu1 }
 0x720   : > { %v3718_v46 = vadd.f32 %v1401_v36, %v1312_v45 }
 0x721   : > { %v2869_v47 = vpop.f32.mrf.mxu1 }
 0x723   : > { %v1317_v48 = vpop.f32.mrf.mxu1 }
 0x724   : > { %v3720_v49 = vadd.f32 %v1406_v39, %v1317_v48 }
 0x725   : > { %v2872_v50 = vpop.f32.mrf.mxu1 }
 0x727   : > { %v1322_v51 = vpop.f32.mrf.mxu1 }
 0x728   : > { %v3722_v52 = vadd.f32 %v1411_v43, %v1322_v51  ;;  %v756_v43 = vld [vmem:[%s3380_s16 + $0x10] sm:$0xff] }
 0x729   : > { %v2875_v53 = vpop.f32.mrf.mxu1  ;;  %2918 = vmatpush3.msra.mxu1 %v756_v43 }
 0x72a   : > { %2943 = vmatprep.subr.mxu1 %v3256_v1 }
 0x72b   : > { %v1505_v54 = vpop.f32.mrf.mxu1 }
 0x72c   : > { %v1519_v55 = vmul.f32 0.35355338, %v1505_v54 }
 0x72d   : > { %v2895_v56 = vpop.f32.mrf.mxu1 }
 0x72e   : > { %v1522_v57 = vsel %vm863_vm7, %v1519_v55, -inf }
 0x72f   : > { %1523 = vmax.xlane.f32.xlu1 %v1522_v57  ;;  %v1510_v58 = vpop.f32.mrf.mxu1 }
 0x730   : > { %v1520_v59 = vmul.f32 0.35355338, %v1510_v58 }
 0x731   : > { %v2898_v60 = vpop.f32.mrf.mxu1 }
 0x732   : > { %v1525_v61 = vsel %vm863_vm7, %v1520_v59, -inf }
 0x733   : > { %1526 = vmax.xlane.f32.xlu0 %v1525_v61  ;;  %v1515_v62 = vpop.f32.mrf.mxu1 }
 0x734   : > { %v1521_v63 = vmul.f32 0.35355338, %v1515_v62 }
 0x735   : > { %v2901_v0 = vpop.f32.mrf.mxu1 }
 0x736   : > { %v1528_v2 = vsel %vm870_vm8, %v1521_v63, -inf }
 0x737   : > { %1529 = vmax.xlane.f32.xlu0 %v1528_v2 }
 0x740   : > { %1559 = vrot.lane.b32.xlu1 %v3585_v42, %s3265_s30 }
 0x744   : > { %1555 = vrot.lane.b32.xlu1 %v3583_v41, %s3265_s30 }
 0x748   : > { %1756 = vrot.lane.b32.xlu1 %v3585_v42, %s3266_s18 }
 0x74c   : > { %1754 = vrot.lane.b32.xlu1 %v3580_v38, %s3266_s18 }
 0x7b8   : > { %v1524_v3 = vpop.xlane.xlu1 %1523 }
 0x7b9   : > { %v1531_v4 = vsub.f32 %v1519_v55, %v1524_v3 }
 0x7bb   : > { %v1534_v5 = vmul.f32 1.442695, %v1531_v4 }
 0x7bc   : > { %v1560_v6 = vpop.permute.xlu1 %1559  ;;  %v1527_v7 = vpop.xlane.xlu0 %1526 }
 0x7bd   : > { %3173 = vpow2.f32 %v1534_v5  ;;  %v1532_v8 = vsub.f32 %v1520_v59, %v1527_v7  ;;  %2903 = vmatpush3.msk.msra.mxu0 %vm915_vm9, %v1560_v6 }
 0x7be   : > { %2904 = vmatprep.subr.mxu0 %v3256_v1 }
 0x7bf   : > { %v1536_v9 = vmul.f32 1.442695, %v1532_v8 }
 0x7c0   : > { %v1530_v14 = vpop.xlane.xlu0 %1529  ;;  %v1556_v23 = vpop.permute.xlu1 %1555 }
 0x7c1   : > { %3175 = vpow2.f32 %v1536_v9  ;;  %v1533_v19 = vsub.f32 %v1521_v63, %v1530_v14 }
 0x7c3   : > { %v1538_v20 = vmul.f32 1.442695, %v1533_v19 }
 0x7c4   : > { %v1757_v24 = vpop.permute.xlu1 %1756 }
 0x7c5   : > { %3177 = vpow2.f32 %v1538_v20 }
 0x7c8   : > { %v1755_v25 = vpop.permute.xlu1 %1754 }
 0x7ca   : > { %v3174_v10 = vpop.eup %3173 }
 0x7cb   : > { %v1540_v11 = vsel %vm863_vm7, %v3174_v10, 0.0 }
 0x7cc   : > { %1541 = vadd.xlane.f32.xlu0 %v1540_v11 }
 0x7ce   : > { %v3176_v12 = vpop.eup %3175 }
 0x7cf   : > { %v1543_v13 = vsel %vm863_vm7, %v3176_v12, 0.0 }
 0x7d0   : > { %1544 = vadd.xlane.f32.xlu1 %v1543_v13 }
 0x7d2   : > { %v3178_v21 = vpop.eup %3177 }
 0x7d3   : > { %v1546_v22 = vsel %vm870_vm8, %v3178_v21, 0.0 }
 0x7e1   : > { %1746 = vrot.lane.b32.xlu1 %v3583_v41, %s3267_s19 }
 0x7e2   : > { %1557 = vrot.lane.b32.xlu0 %v3580_v38, %s3265_s30 }
 0x7e5   : > { %1750 = vrot.lane.b32.xlu1 %v3585_v42, %s3267_s19 }
 0x801   : > { %1547 = vadd.xlane.f32.xlu0 %v1546_v22 }
 0x817   : > { %1752 = vrot.lane.b32.xlu0 %v3583_v41, %s3266_s18 }
 0x81b   : > { %1748 = vrot.lane.b32.xlu0 %v3580_v38, %s3267_s19 }
 0x855   : > { %v1542_v26 = vpop.xlane.xlu0 %1541 }
 0x856   : > { %3179 = vrcp.f32 %v1542_v26 }
 0x859   : > { %v1545_v27 = vpop.xlane.xlu1 %1544  ;;  %v1558_v28 = vpop.permute.xlu0 %1557 }
 0x85a   : > { %3181 = vrcp.f32 %v1545_v27  ;;  %2905 = vmatpush3.msra.mxu0 %v1558_v28  ;;  %v757_v27 = vld [vmem:[%s3380_s16 + $0x18] sm:$0xff] }
 0x85b   : > { %2906 = vmatprep.subr.mxu0 %v3256_v1 }
 0x85c   : > { %2907 = vmatpush3.msra.mxu0 %v1556_v23 }
 0x85d   : > { %2928 = vmatprep.subr.mxu0 %v3256_v1  ;;  %v1747_v37 = vpop.permute.xlu1 %1746 }
 0x861   : > { %v1751_v40 = vpop.permute.xlu1 %1750 }
 0x863   : > { %v3180_v29 = vpop.eup %3179 }
 0x864   : > { %v1552_v30 = vmul.f32 %v3180_v29, %v3174_v10 }
 0x866   : > { %2909 = vmatmul.mubr.msk.f32.vlgmr.msra.gmra.mxu0 %vm863_vm7, %v1552_v30 }
 0x867   : > { %v3182_v31 = vpop.eup %3181  ;;  %2929 = vmatpush3.xpose.msk.msra.mxu0 %vm767_vm6, %v1757_v24  ;;  %2911 = vmatprep.mubr.msk.f32.mxu0 %vm3257_vm5, %v3256_v1 }
 0x868   : > { %2930 = vmatprep.subr.mxu0 %v3256_v1  ;;  %v1553_v32 = vmul.f32 %v3182_v31, %v3176_v12 }
 0x86a   : > { %2912 = vmatmul.mubr.msk.f32.gmra.mxu0 %vm863_vm7, %v1553_v32 }
 0x86b   : > { %2931 = vmatpush3.xpose.msk.msra.mxu0 %vm767_vm6, %v1755_v25  ;;  %2914 = vmatprep.mubr.msk.f32.mxu0 %vm3257_vm5, %v3256_v1 }
 0x86c   : > { %2932 = vmatprep.subr.mxu0 %v3256_v1 }
 0x88a   : > { %v1548_v33 = vpop.xlane.xlu0 %1547 }
 0x88b   : > { %3183 = vrcp.f32 %v1548_v33 }
 0x88e   : > { %v1753_v34 = vpop.permute.xlu0 %1752 }
 0x88f   : > { %2933 = vmatpush3.xpose.msk.msra.mxu0 %vm767_vm6, %v1753_v34 }
 0x890   : > { %2958 = vmatprep.subr.mxu0 %v3256_v1 }
 0x892   : > { %v1749_v39 = vpop.permute.xlu0 %1748 }
 0x898   : > { %v3184_v35 = vpop.eup %3183 }
 0x899   : > { %v1554_v36 = vmul.f32 %v3184_v35, %v3178_v21 }
 0x89b   : > { %2915 = vmatmul.mubr.msk.f32.gmra.mxu0 %vm863_vm7, %v1554_v36 }
 0x89c   : > { %2934 = vmatprep.mubr.msk.f32.mxu0 %vm3257_vm5, %v3256_v1 }
 0x89f   : > { %2935 = vmatmul.mubr.msk.f32.vlgmr.msra.gmra.mxu0 %vm767_vm6, %v1747_v37 }
 0x8a0   : > { %2937 = vmatprep.mubr.msk.f32.mxu0 %vm3257_vm5, %v3256_v1  ;;  %2959 = vmatpush3.msra.mxu0 %v757_v27  ;;  %v2140_v27 = vld [vmem:[%s3385_s23] sm:$0xff] }
 0x8a1   : > { %2986 = vmatprep.subr.mxu0 %v3256_v1 }
 0x8a3   : > { %2938 = vmatmul.mubr.msk.f32.gmra.mxu0 %vm767_vm6, %v1749_v39 }
 0x8a4   : > { %2940 = vmatprep.mubr.msk.f32.mxu0 %vm3257_vm5, %v3256_v1 }
 0x8a7   : > { %2941 = vmatmul.mubr.msk.f32.gmra.mxu0 %vm767_vm6, %v1751_v40 }
 0x8a8   : > { %2960 = vmatprep.mubr.msk.f32.mxu0 %vm3257_vm5, %v3256_v1 }
 0x926   : > { %v1640_v44 = vpop.f32.mrf.mxu0 }
 0x927   : > { %2920 = vmatmul.mubr.msk.f32.vlgmr.msra.gmra.mxu1 %vm767_vm6, %v1640_v44 }
 0x928   : > { %v2910_v45 = vpop.f32.mrf.mxu0  ;;  %2922 = vmatprep.mubr.msk.f32.mxu1 %vm3257_vm5, %v3256_v1 }
 0x92a   : > { %v1645_v47 = vpop.f32.mrf.mxu0 }
 0x92b   : > { %2923 = vmatmul.mubr.msk.f32.gmra.mxu1 %vm767_vm6, %v1645_v47  ;;  %v2082_v47 = vsub.s32 5, %v3556_v15 }
 0x92c   : > { %v2913_v48 = vpop.f32.mrf.mxu0  ;;  %2925 = vmatprep.mubr.msk.f32.mxu1 %vm3257_vm5, %v3256_v1 }
 0x95b   : > { %v1650_v50 = vpop.f32.mrf.mxu0 }
 0x95c   : > { %2926 = vmatmul.mubr.msk.f32.gmra.mxu1 %vm767_vm6, %v1650_v50 }
 0x95d   : > { %v2916_v51 = vpop.f32.mrf.mxu0  ;;  %2949 = vmatprep.mubr.msk.f32.mxu1 %vm3257_vm5, %v3256_v1 }
 0x95e   : > { %v2083_v51 = vrot.slane %v3560_v17, %v2082_v47 }
 0x95f   : > { %v1836_v53 = vpop.f32.mrf.mxu0 }
 0x960   : > { %v1850_v54 = vmul.f32 0.35355338, %v1836_v53 }
 0x961   : > { %v2936_v55 = vpop.f32.mrf.mxu0 }
 0x962   : > { %v1853_v56 = vsel %vm863_vm7, %v1850_v54, -inf }
 0x963   : > { %1854 = vmax.xlane.f32.xlu0 %v1853_v56  ;;  %v1841_v57 = vpop.f32.mrf.mxu0 }
 0x964   : > { %v1851_v58 = vmul.f32 0.35355338, %v1841_v57 }
 0x965   : > { %v2939_v59 = vpop.f32.mrf.mxu0 }
 0x966   : > { %v1856_v60 = vsel %vm863_vm7, %v1851_v58, -inf }
 0x967   : > { %1857 = vmax.xlane.f32.xlu1 %v1856_v60  ;;  %v1846_v61 = vpop.f32.mrf.mxu0  ;;  %v3210_v60 = vld [vmem:[#allocation2 + $0x8] sm:$0xff] }
 0x968   : > { %v1852_v62 = vmul.f32 0.35355338, %v1846_v61 }
 0x969   : > { %v2942_v63 = vpop.f32.mrf.mxu0 }
 0x96a   : > { %v1859_v0 = vsel %vm870_vm8, %v1852_v62, -inf }
 0x96b   : > { %1860 = vmax.xlane.f32.xlu0 %v1859_v0 }
 0x978   : > { %1888 = vrot.lane.b32.xlu1 %v3580_v38, %s3268_s15 }
 0x9e7   : > { %v1729_v2 = vpop.f32.mrf.mxu1 }
 0x9e8   : > { %v3786_v3 = vadd.f32 %v1729_v2, %v3718_v46 }
 0x9e9   : > { %v2921_v4 = vpop.f32.mrf.mxu1 }
 0x9eb   : > { %v1734_v5 = vpop.f32.mrf.mxu1 }
 0x9ec   : > { %v3789_v6 = vadd.f32 %v1734_v5, %v3720_v49  ;;  %v1855_v7 = vpop.xlane.xlu0 %1854 }
 0x9ed   : > { %v1862_v8 = vsub.f32 %v1850_v54, %v1855_v7  ;;  %v2924_v9 = vpop.f32.mrf.mxu1  ;;  %v3209_v54 = vld [vmem:[#allocation2] sm:$0xff] }
 0x9ef   : > { %v1865_v10 = vmul.f32 1.442695, %v1862_v8 }
 0x9f0   : > { %v1858_v11 = vpop.xlane.xlu1 %1857 }
 0x9f1   : > { %3185 = vpow2.f32 %v1865_v10  ;;  %v1863_v12 = vsub.f32 %v1851_v58, %v1858_v11 }
 0x9f3   : > { %v1867_v13 = vmul.f32 1.442695, %v1863_v12 }
 0x9f4   : > { %v1861_v14 = vpop.xlane.xlu0 %1860  ;;  %v1889_v29 = vpop.permute.xlu1 %1888 }
 0x9f5   : > { %3187 = vpow2.f32 %v1867_v13  ;;  %v1864_v38 = vsub.f32 %v1852_v62, %v1861_v14 }
 0x9f7   : > { %v1869_v19 = vmul.f32 1.442695, %v1864_v38 }
 0x9f9   : > { %3189 = vpow2.f32 %v1869_v19 }
 0x9fe   : > { %v3186_v46 = vpop.eup %3185 }
 0x9ff   : > { %v1871_v20 = vsel %vm863_vm7, %v3186_v46, 0.0 }
 0xa00   : > { %1872 = vadd.xlane.f32.xlu0 %v1871_v20 }
 0xa02   : > { %v3188_v49 = vpop.eup %3187 }
 0xa03   : > { %v1874_v21 = vsel %vm863_vm7, %v3188_v49, 0.0 }
 0xa04   : > { %1875 = vadd.xlane.f32.xlu0 %v1874_v21 }
 0xa06   : > { %v3190_v22 = vpop.eup %3189 }
 0xa07   : > { %v1877_v23 = vsel %vm870_vm8, %v3190_v22, 0.0 }
 0xa08   : > { %1878 = vadd.xlane.f32.xlu1 %v1877_v23 }
 0xa19   : > { %1886 = vrot.lane.b32.xlu1 %v3583_v41, %s3268_s15 }
 0xa1a   : > { %1890 = vrot.lane.b32.xlu0 %v3585_v42, %s3268_s15 }
 0xa1c   : > { %v1739_v24 = vpop.f32.mrf.mxu1 }
 0xa1d   : > { %v1745_v25 = vadd.f32 %v1739_v24, %v3722_v52  ;;  %v2143_v24 = vld [vmem:[%s3385_s23 + $0x18] sm:$0xff] }
 0xa1e   : > { %v2927_v26 = vpop.f32.mrf.mxu1 }
 0xa1f   : > { %v2141_v26 = vld [vmem:[%s3385_s23 + $0x8] sm:$0xff] }
 0xa89   : > { %v1873_v28 = vpop.xlane.xlu0 %1872 }
 0xa8a   : > { %3191 = vrcp.f32 %v1873_v28 }
 0xa8d   : > { %v1876_v30 = vpop.xlane.xlu0 %1875 }
 0xa8e   : > { %3193 = vrcp.f32 %v1876_v30 }
 0xa91   : > { %v1879_v31 = vpop.xlane.xlu1 %1878  ;;  %v1891_v32 = vpop.permute.xlu0 %1890 }
 0xa92   : > { %3195 = vrcp.f32 %v1879_v31  ;;  %2944 = vmatpush3.msk.msra.mxu1 %vm915_vm9, %v1891_v32 }
 0xa93   : > { %2945 = vmatprep.subr.mxu1 %v3256_v1 }
 0xa94   : > { %2946 = vmatpush3.msra.mxu1 %v1889_v29 }
 0xa95   : > { %v1887_v41 = vpop.permute.xlu1 %1886  ;;  %2947 = vmatprep.subr.mxu1 %v3256_v1 }
 0xa96   : > { %2948 = vmatpush3.msra.mxu1 %v1887_v41 }
 0xa97   : > { %v3192_v42 = vpop.eup %3191  ;;  %2969 = vmatprep.subr.mxu1 %v3256_v1 }
 0xa98   : > { %v1883_v52 = vmul.f32 %v3192_v42, %v3186_v46 }
 0xa9a   : > { %2950 = vmatmul.mubr.msk.f32.vlgmr.msra.gmra.mxu1 %vm863_vm7, %v1883_v52 }
 0xa9b   : > { %v3194_v33 = vpop.eup %3193  ;;  %2952 = vmatprep.mubr.msk.f32.mxu1 %vm3257_vm5, %v3256_v1  ;;  %2970 = vmatpush3.msra.mxu1 %v2143_v24 }
 0xa9c   : > { %v1884_v34 = vmul.f32 %v3194_v33, %v3188_v49  ;;  %2971 = vmatprep.subr.mxu1 %v3256_v1 }
 0xa9e   : > { %2953 = vmatmul.mubr.msk.f32.gmra.mxu1 %vm863_vm7, %v1884_v34  ;;  %v2128_v34 = vsub.s32 2, %v3556_v15 }
 0xa9f   : > { %v3196_v35 = vpop.eup %3195  ;;  %2955 = vmatprep.mubr.msk.f32.mxu1 %vm3257_vm5, %v3256_v1 }
 0xaa0   : > { %v1885_v36 = vmul.f32 %v3196_v35, %v3190_v22  ;;  %v2135_v35 = vsub.s32 3, %v3556_v15 }
 0xaa2   : > { %2956 = vmatmul.mubr.msk.f32.gmra.mxu1 %vm863_vm7, %v1885_v36  ;;  %v3853_v36 = vld [vmem:[%s3395_s11] sm:$0xff] }
 0xaa3   : > { %2977 = vmatprep.mubr.msk.f32.mxu1 %vm3257_vm5, %v3256_v1 }
 0xb5a   : > { %v1971_v37 = vpop.f32.mrf.mxu1 }
 0xb5b   : > { %2961 = vmatmul.mubr.msk.f32.vlgmr.msra.gmra.mxu0 %vm767_vm6, %v1971_v37  ;;  %v2129_v37 = vrot.slane %v3853_v36, %v2128_v34 }
 0xb5c   : > { %v2951_v39 = vpop.f32.mrf.mxu1  ;;  %2963 = vmatprep.mubr.msk.f32.mxu0 %vm3257_vm5, %v3256_v1 }
 0xb5e   : > { %v1976_v40 = vpop.f32.mrf.mxu1 }
 0xb5f   : > { %2964 = vmatmul.mubr.msk.f32.gmra.mxu0 %vm767_vm6, %v1976_v40 }
 0xb60   : > { %v2954_v43 = vpop.f32.mrf.mxu1  ;;  %2966 = vmatprep.mubr.msk.f32.mxu0 %vm3257_vm5, %v3256_v1 }
 0xb61   : > { %v2136_v43 = vrot.slane %v3853_v36, %v2135_v35 }
 0xb62   : > { %v1981_v44 = vpop.f32.mrf.mxu1 }
 0xb63   : > { %2967 = vmatmul.mubr.msk.f32.gmra.mxu0 %vm767_vm6, %v1981_v44 }
 0xb64   : > { %v2957_v45 = vpop.f32.mrf.mxu1  ;;  %3018 = vmatprep.mubr.msk.f32.mxu0 %vm3257_vm5, %v3256_v1 }
 0xc1b   : > { %v2060_v48 = vpop.f32.mrf.mxu0 }
 0xc1c   : > { %v2074_v50 = vadd.f32 %v2060_v48, %v3786_v3  ;;  %v3211_v3 = vld [vmem:[#allocation2 + $0x10] sm:$0x1] }
 0xc1d   : > { %v2962_v53 = vpop.f32.mrf.mxu0 }
 0xc1e   : > { %v2077_v55 = vadd.f32 %v3209_v54, %v2074_v50 }
 0xc1f   : > { %v2065_v56 = vpop.f32.mrf.mxu0 }
 0xc20   : > { %v3824_v57 = vadd.f32 %v2083_v51, %v2077_v55  ;;  %v2075_v58 = vadd.f32 %v2065_v56, %v3789_v6 }
 0xc21   : > { %v2965_v59 = vpop.f32.mrf.mxu0 }
 0xc22   : > { %v2078_v61 = vadd.f32 %v3210_v60, %v2075_v58  ;;  %v2087_v62 = vsel %vm601_vm3, %v3824_v57, 0.0  ;;  %v2279_v58 = vld [vmem:[%s3390_s21 + $0x78] sm:$0xff]  ;;  %v2278_v59 = vld [vmem:[%s3390_s21 + $0x70] sm:$0xff]  ;;  %v2277_v60 = vld [vmem:[%s3390_s21 + $0x68] sm:$0xff] }
 0xc23   : > { %2088 = vadd.xlane.f32.xlu1 %v2087_v62  ;;  %v2070_v63 = vpop.f32.mrf.mxu0  ;;  %2987 = vmatpush3.msra.mxu0 %v2279_v58  ;;  %v2275_v62 = vld [vmem:[%s3390_s21 + $0x58] sm:$0xff] }
 0xc24   : > { %v3829_v0 = vadd.f32 %v2083_v51, %v2078_v61  ;;  %v2076_v2 = vadd.f32 %v2070_v63, %v1745_v25  ;;  %v2142_v25 = vld [vmem:[%s3385_s23 + $0x10] sm:$0xff]  ;;  %2988 = vmatprep.subr.mxu0 %v3256_v1  ;;  %v2276_v61 = vld [vmem:[%s3390_s21 + $0x60] sm:$0xff] }
 0xc25   : > { %v2968_v17 = vpop.f32.mrf.mxu0  ;;  %2972 = vmatpush3.msra.mxu1 %v2142_v25  ;;  %2989 = vmatpush3.msra.mxu0 %v2278_v59  ;;  %v2274_v63 = vld [vmem:[%s3390_s21 + $0x50] sm:$0xff] }
 0xc26   : > { %v2079_v4 = vadd.f32 %v3211_v3, %v2076_v2  ;;  %v2090_v5 = vsel %vm601_vm3, %v3829_v0, 0.0  ;;  %2973 = vmatprep.subr.mxu1 %v3256_v1  ;;  %2990 = vmatprep.subr.mxu0 %v3256_v1  ;;  %v2273_v2 = vld [vmem:[%s3390_s21 + $0x48] sm:$0xff]  ;;  %v2272_v17 = vld [vmem:[%s3390_s21 + $0x40] sm:$0xff]  ;;  %v2271_v3 = vld [vmem:[%s3390_s21 + $0x38] sm:$0xff] }
 0xc27   : > { %2091 = vadd.xlane.f32.xlu0 %v2090_v5  ;;  %2974 = vmatpush3.msra.mxu1 %v2141_v26  ;;  %v2269_v5 = vld [vmem:[%s3390_s21 + $0x28] sm:$0xff] }
 0xc28   : > { %v3833_v7 = vadd.f32 %v2083_v51, %v2079_v4  ;;  %2975 = vmatprep.subr.mxu1 %v3256_v1  ;;  %2991 = vmatpush3.msra.mxu0 %v2277_v60  ;;  %v2270_v4 = vld [vmem:[%s3390_s21 + $0x30] sm:$0xff] }
 0xc29   : > { %2976 = vmatpush3.msra.mxu1 %v2140_v27  ;;  %2992 = vmatprep.subr.mxu0 %v3256_v1 }
 0xc2a   : > { %v2093_v6 = vsel %vm608_vm4, %v3833_v7, 0.0  ;;  %2993 = vmatpush3.msra.mxu0 %v2276_v61 }
 0xc2b   : > { %2094 = vadd.xlane.f32.xlu0 %v2093_v6  ;;  %2994 = vmatprep.subr.mxu0 %v3256_v1  ;;  %v2268_v6 = vld [vmem:[%s3390_s21 + $0x20] sm:$0xff] }
 0xc2c   : > { %2995 = vmatpush3.msra.mxu0 %v2275_v62 }
 0xc2d   : > { %2996 = vmatprep.subr.mxu0 %v3256_v1 }
 0xc2e   : > { %2997 = vmatpush3.msra.mxu0 %v2274_v63 }
 0xc2f   : > { %2998 = vmatprep.subr.mxu0 %v3256_v1 }
 0xc30   : > { %2999 = vmatpush3.msra.mxu0 %v2273_v2 }
 0xc31   : > { %3000 = vmatprep.subr.mxu0 %v3256_v1 }
 0xc32   : > { %3001 = vmatpush3.msra.mxu0 %v2272_v17 }
 0xc33   : > { %3002 = vmatprep.subr.mxu0 %v3256_v1 }
 0xc34   : > { %3003 = vmatpush3.msra.mxu0 %v2271_v3 }
 0xc35   : > { %3004 = vmatprep.subr.mxu0 %v3256_v1 }
 0xc36   : > { %3005 = vmatpush3.msra.mxu0 %v2270_v4 }
 0xc37   : > { %3006 = vmatprep.subr.mxu0 %v3256_v1 }
 0xc38   : > { %3007 = vmatpush3.msra.mxu0 %v2269_v5 }
 0xc39   : > { %3008 = vmatprep.subr.mxu0 %v3256_v1 }
 0xc3a   : > { %3009 = vmatpush3.msra.mxu0 %v2268_v6 }
 0xc3b   : > { %3010 = vmatprep.subr.mxu0 %v3256_v1 }
 0xcac   : > { %v2089_v8 = vpop.xlane.xlu1 %2088 }
 0xcad   : > { %v2096_v9 = vmul.f32 0.03125, %v2089_v8  ;;  %v2267_v8 = vld [vmem:[%s3390_s21 + $0x18] sm:$0xff] }
 0xcae   : > { %3011 = vmatpush3.msra.mxu0 %v2267_v8 }
 0xcaf   : > { %v2099_v10 = vsub.f32 %v3824_v57, %v2096_v9  ;;  %3012 = vmatprep.subr.mxu0 %v3256_v1  ;;  %v2266_v9 = vld [vmem:[%s3390_s21 + $0x10] sm:$0xff] }
 0xcb0   : > { %v2092_v11 = vpop.xlane.xlu0 %2091  ;;  %3013 = vmatpush3.msra.mxu0 %v2266_v9 }
 0xcb1   : > { %v2097_v12 = vmul.f32 0.03125, %v2092_v11  ;;  %v2102_v13 = vmul.f32 %v2099_v10, %v2099_v10  ;;  %3014 = vmatprep.subr.mxu0 %v3256_v1  ;;  %v2264_v11 = vld [vmem:[%s3390_s21] sm:$0xff] }
 0xcb3   : > { %v2100_v14 = vsub.f32 %v3829_v0, %v2097_v12  ;;  %v2105_v38 = vsel %vm601_vm3, %v2102_v13, 0.0  ;;  %v2146_v12 = vsub.s32 6, %v3556_v15 }
 0xcb4   : > { %2106 = vadd.xlane.f32.xlu0 %v2105_v38  ;;  %v2095_v19 = vpop.xlane.xlu0 %2094 }
 0xcb5   : > { %v2098_v46 = vmul.f32 0.03125, %v2095_v19  ;;  %v2103_v20 = vmul.f32 %v2100_v14, %v2100_v14  ;;  %v2147_v13 = vrot.slane %v3853_v36, %v2146_v12 }
 0xcb7   : > { %v2101_v49 = vsub.f32 %v3833_v7, %v2098_v46  ;;  %v2108_v21 = vsel %vm601_vm3, %v2103_v20, 0.0 }
 0xcb8   : > { %2109 = vadd.xlane.f32.xlu1 %v2108_v21 }
 0xcb9   : > { %v2104_v22 = vmul.f32 %v2101_v49, %v2101_v49 }
 0xcbb   : > { %v2111_v23 = vsel %vm608_vm4, %v2104_v22, 0.0 }
 0xcbc   : > { %2112 = vadd.xlane.f32.xlu0 %v2111_v23 }
 0xd3d   : > { %v2107_v28 = vpop.xlane.xlu0 %2106 }
 0xd3e   : > { %v2114_v29 = vmul.f32 0.03125, %v2107_v28 }
 0xd40   : > { %v2117_v30 = vadd.f32 1e-06, %v2114_v29 }
 0xd41   : > { %v2110_v31 = vpop.xlane.xlu1 %2109 }
 0xd42   : > { %3197 = vrsqrt.f32 %v2117_v30  ;;  %v2115_v32 = vmul.f32 0.03125, %v2110_v31 }
 0xd44   : > { %v2118_v41 = vadd.f32 1e-06, %v2115_v32 }
 0xd45   : > { %v2113_v42 = vpop.xlane.xlu0 %2112 }
 0xd46   : > { %3199 = vrsqrt.f32 %v2118_v41  ;;  %v2116_v52 = vmul.f32 0.03125, %v2113_v42 }
 0xd48   : > { %v2119_v33 = vadd.f32 1e-06, %v2116_v52 }
 0xd4a   : > { %3201 = vrsqrt.f32 %v2119_v33 }
 0xd4f   : > { %v3198_v39 = vpop.eup %3197 }
 0xd50   : > { %v2123_v40 = vmul.f32 %v3198_v39, %v2099_v10  ;;  %v2265_v10 = vld [vmem:[%s3390_s21 + $0x8] sm:$0xff] }
 0xd51   : > { %3015 = vmatpush3.msra.mxu0 %v2265_v10 }
 0xd52   : > { %v2130_v44 = vmul.f32 %v2129_v37, %v2123_v40  ;;  %3016 = vmatprep.subr.mxu0 %v3256_v1 }
 0xd53   : > { %v3200_v45 = vpop.eup %3199  ;;  %3017 = vmatpush3.msra.mxu0 %v2264_v11 }
 0xd54   : > { %v2137_v47 = vadd.f32 %v2136_v43, %v2130_v44  ;;  %v2124_v48 = vmul.f32 %v3200_v45, %v2100_v14 }
 0xd56   : > { %2978 = vmatmul.mubr.msk.f32.vlgmr.msra.gmra.mxu1 %vm601_vm3, %v2137_v47  ;;  %v2131_v50 = vmul.f32 %v2129_v37, %v2124_v48 }
 0xd57   : > { %v3202_v51 = vpop.eup %3201  ;;  %2980 = vmatprep.mubr.msk.f32.mxu1 %vm3257_vm5, %v3256_v1 }
 0xd58   : > { %v2138_v53 = vadd.f32 %v2136_v43, %v2131_v50  ;;  %v2125_v54 = vmul.f32 %v3202_v51, %v2101_v49 }
 0xd5a   : > { %2981 = vmatmul.mubr.msk.f32.gmra.mxu1 %vm601_vm3, %v2138_v53  ;;  %v2132_v55 = vmul.f32 %v2129_v37, %v2125_v54 }
 0xd5b   : > { %2983 = vmatprep.mubr.msk.f32.mxu1 %vm3257_vm5, %v3256_v1 }
 0xd5c   : > { %v2139_v56 = vadd.f32 %v2136_v43, %v2132_v55  ;;  %v2365_v55 = vsub.s32 7, %v3556_v15 }
 0xd5e   : > { %2984 = vmatmul.mubr.msk.f32.gmra.mxu1 %vm601_vm3, %v2139_v56  ;;  %v2366_v56 = vrot.slane %v3853_v36, %v2365_v55 }
 0xe16   : > { %v2223_v14 = vpop.f32.mrf.mxu1 }
 0xe17   : > { %v2224_v38 = vadd.f32 %v2223_v14, %v2147_v13 }
 0xe18   : > { %v2979_v19 = vpop.f32.mrf.mxu1 }
 0xe19   : > { %v2237_v46 = vmul.f32 %v2224_v38, %v2224_v38 }
 0xe1a   : > { %v2228_v20 = vpop.f32.mrf.mxu1 }
 0xe1b   : > { %v2240_v49 = vmul.f32 %v2237_v46, %v2224_v38  ;;  %v2229_v21 = vadd.f32 %v2228_v20, %v2147_v13 }
 0xe1c   : > { %v2982_v22 = vpop.f32.mrf.mxu1 }
 0xe1d   : > { %v2243_v23 = vmul.f32 0.044715, %v2240_v49  ;;  %v2238_v24 = vmul.f32 %v2229_v21, %v2229_v21 }
 0xe1e   : > { %v2233_v25 = vpop.f32.mrf.mxu1 }
 0xe1f   : > { %v2246_v26 = vadd.f32 %v2243_v23, %v2224_v38  ;;  %v2241_v27 = vmul.f32 %v2238_v24, %v2229_v21  ;;  %v2234_v28 = vadd.f32 %v2233_v25, %v2147_v13 }
 0xe20   : > { %v2985_v29 = vpop.f32.mrf.mxu1 }
 0xe21   : > { %v2249_v30 = vmul.f32 0.7978846, %v2246_v26  ;;  %v2244_v31 = vmul.f32 0.044715, %v2241_v27  ;;  %v2239_v32 = vmul.f32 %v2234_v28, %v2234_v28 }
 0xe23   : > { %3203 = vtanh.f32 %v2249_v30  ;;  %v2247_v41 = vadd.f32 %v2244_v31, %v2229_v21  ;;  %v2242_v42 = vmul.f32 %v2239_v32, %v2234_v28 }
 0xe25   : > { %v2250_v52 = vmul.f32 0.7978846, %v2247_v41  ;;  %v2245_v33 = vmul.f32 0.044715, %v2242_v42 }
 0xe27   : > { %3205 = vtanh.f32 %v2250_v52  ;;  %v2248_v34 = vadd.f32 %v2245_v33, %v2234_v28 }
 0xe29   : > { %v2251_v35 = vmul.f32 0.7978846, %v2248_v34 }
 0xe2b   : > { %3207 = vtanh.f32 %v2251_v35 }
 0xe30   : > { %v3204_v37 = vpop.eup %3203 }
 0xe31   : > { %v2255_v39 = vadd.f32 1.0, %v3204_v37 }
 0xe33   : > { %v2258_v40 = vmul.f32 0.5, %v2255_v39 }
 0xe34   : > { %v3206_v43 = vpop.eup %3205 }
 0xe35   : > { %v2261_v44 = vmul.f32 %v2258_v40, %v2224_v38  ;;  %v2256_v45 = vadd.f32 1.0, %v3206_v43 }
 0xe37   : > { %3019 = vmatmul.mubr.f32.vlgmr.msra.gmra.mxu0 %v2261_v44  ;;  %v2259_v47 = vmul.f32 0.5, %v2256_v45 }
 0xe38   : > { %v3208_v48 = vpop.eup %3207  ;;  %3021 = vmatprep.mubr.msk.f32.mxu0 %vm3257_vm5, %v3256_v1 }
 0xe39   : > { %v2262_v50 = vmul.f32 %v2259_v47, %v2229_v21  ;;  %v2257_v51 = vadd.f32 1.0, %v3208_v48 }
 0xe3b   : > { %3022 = vmatmul.mubr.f32.gmra.mxu0 %v2262_v50  ;;  %v2260_v53 = vmul.f32 0.5, %v2257_v51 }
 0xe3c   : > { %3024 = vmatprep.mubr.msk.f32.mxu0 %vm3257_vm5, %v3256_v1 }
 0xe3d   : > { %v2263_v54 = vmul.f32 %v2260_v53, %v2234_v28 }
 0xe3f   : > { %3025 = vmatmul.mubr.f32.gmra.mxu0 %v2263_v54 }
 0xef7   : > { %v2346_v58 = vpop.f32.mrf.mxu0 }
 0xef8   : > { %v2360_v59 = vadd.f32 %v2346_v58, %v3824_v57 }
 0xef9   : > { %v3020_v60 = vpop.f32.mrf.mxu0 }
 0xefa   : > { %v2367_v61 = vadd.f32 %v2366_v56, %v2360_v59 }
 0xefb   : > { %v2351_v62 = vpop.f32.mrf.mxu0 }
 0xefc   : > { %2370 = vst.msk [vmem:[#allocation2] sm:$0xff] %vm601_vm3, %v2367_v61  ;;  %v2361_v63 = vadd.f32 %v2351_v62, %v3829_v0 }
 0xefd   : > { %v3023_v2 = vpop.f32.mrf.mxu0 }
 0xefe   : > { %v2368_v17 = vadd.f32 %v2366_v56, %v2361_v63 }
 0xeff   : > { %v2356_v3 = vpop.f32.mrf.mxu0 }
 0xf00   : > { %2371 = vst.msk [vmem:[#allocation2 + $0x8] sm:$0xff] %vm601_vm3, %v2368_v17  ;;  %v2362_v1 = vadd.f32 %v2356_v3, %v3833_v7  ;;  %2376 = sbr.rel (%p2678_p8) target bundleno = 4349 (0x10fd), region = 68 }
 0xf01   : > { %v3026_v4 = vpop.f32.mrf.mxu0 }
 0xf02   : > { %v2369_v5 = vadd.f32 %v2366_v56, %v2362_v1 }
 0xf04   : > { %2372 = vst.msk [vmem:[#allocation2 + $0x10] sm:$0x1] %vm608_vm4, %v2369_v5 }
 0xf05   : > { %v2378_v57 = vsel %vm601_vm3, %v2367_v61, 0.0  ;;  %v2404_v7 = vld [vmem:[%s3956_s4 + $0x18] sm:$0xff]  ;;  %v3269_v10 = vmov 0.0   ;;  %v2403_v11 = vld [vmem:[%s3956_s4 + $0x10] sm:$0xff]  ;;  %vm3270_vm10 = vmmov 0   ;;  %v2402_v12 = vld [vmem:[%s3956_s4 + $0x8] sm:$0xff] }
 0xf06   : > { %2379 = vadd.xlane.f32.xlu0 %v2378_v57  ;;  %3027 = vmatprep.subr.mxu0 %v3269_v10  ;;  %v2401_v13 = vld [vmem:[%s3956_s4] sm:$0xff]  ;;  %vm2481_vm11 = vcmask 516096  }
 0xf07   : > { %3035 = vmatprep.mubr.msk.f32.mxu0 %vm3270_vm10, %v3269_v10  ;;  %3028 = vmatpush3.msra.mxu0 %v2404_v7  ;;  %v2377_v46 = vld [vmem:[%s3955_s3] sm:$0xff] }
 0xf08   : > { %3029 = vmatprep.subr.mxu0 %v3269_v10  ;;  %v2394_v20 = vrot.slane %v2377_v46, %v645_v16  ;;  %v2399_v22 = vrot.slane %v2377_v46, %v652_v18  ;;  %v2406_v25 = vrot.slane %v2377_v46, 2 }
 0xf09   : > { %3030 = vmatpush3.msra.mxu0 %v2403_v11 }
 0xf0a   : > { %3031 = vmatprep.subr.mxu0 %v3269_v10 }
 0xf0b   : > { %3032 = vmatpush3.msra.mxu0 %v2402_v12 }
 0xf0c   : > { %3033 = vmatprep.subr.mxu0 %v3269_v10 }
 0xf0d   : > { %3034 = vmatpush3.msra.mxu0 %v2401_v13 }
 0xf8f   : > { %v2380_v36 = vpop.xlane.xlu0 %2379 }
 0xf90   : > { %v2381_v6 = vmul.f32 0.03125, %v2380_v36 }
 0xf92   : > { %v2382_v0 = vsub.f32 %v2367_v61, %v2381_v6 }
 0xf94   : > { %v2383_v8 = vmul.f32 %v2382_v0, %v2382_v0 }
 0xf96   : > { %v2384_v9 = vsel %vm601_vm3, %v2383_v8, 0.0 }
 0xf97   : > { %2385 = vadd.xlane.f32.xlu0 %v2384_v9 }
0x1020   : > { %v2386_v14 = vpop.xlane.xlu0 %2385 }
0x1021   : > { %v2387_v38 = vmul.f32 0.03125, %v2386_v14 }
0x1023   : > { %v2388_v19 = vadd.f32 1e-06, %v2387_v38 }
0x1025   : > { %3213 = vrsqrt.f32 %v2388_v19 }
0x1032   : > { %v3214_v49 = vpop.eup %3213 }
0x1033   : > { %v2390_v21 = vmul.f32 %v3214_v49, %v2382_v0 }
0x1035   : > { %v2395_v23 = vmul.f32 %v2394_v20, %v2390_v21 }
0x1037   : > { %v2400_v24 = vadd.f32 %v2399_v22, %v2395_v23 }
0x1039   : > { %3036 = vmatmul.mubr.msk.f32.vlgmr.msra.gmra.mxu0 %vm601_vm3, %v2400_v24 }
0x10f9   : > { %v2477_v26 = vpop.f32.mrf.mxu0 }
0x10fa   : > { %v2478_v27 = vadd.f32 %v2477_v26, %v2406_v25 }
0x10fb   : > { %v3037_v28 = vpop.f32.mrf.mxu0 }
0x10fc   : > { %2482 = vst.msk [vmem:[%s3971_s22] sm:$0x1] %vm2481_vm11, %v2478_v27 }
0x10fd PF: > { %s3972_s27 = sld [smem:[#allocation5_spill]] }
0x10fe   : > { %s3973_s13 = sld [smem:[#allocation3_spill]] }
0x10ff   : > { %s3974_s14 = sld [smem:[#allocation4_spill]] }
0x1100   : > { %s3975_s15 = sld [smem:[#allocation6_spill]] }
0x1101   : > { %s3976_s16 = sld [smem:[#allocation7_spill]] }
0x1103   : > { %s20_s17 = sadd.s32 1, %s3972_s27  }
0x1104   : > { %p17_p9 = scmp.ge.s32.totalorder %s20_s17, 6  }
0x1106   :  { %19 = sbr.rel (!%p17_p9) target bundleno = 3 (0x3), region = 113 }

</bundles_post_ra>
